<compile_context>
chip_gen: v6e
topology: v6e:2x2x1
jax: 0.10.0
libtpu: 0.0.40
codegen_flags: <defaults>
</compile_context>

<pallas_src>
import numpy as np
import jax
import jax.numpy as jnp
from jax.experimental import pallas as pl
from jax.experimental.pallas import tpu as pltpu

P_OUT = 4        # policy logits (4 grid-world actions)
V_HID = 50       # value-head hidden width
N_LANES = 128    # lane-dense padded head width (4 policy + 50 value-hidden -> 128)


def _round_up(x, m):
    return (x + m - 1) // m * m


# ----------------------------------------------------------------------------
# Fused whole-model kernel (BT batch elements per grid step).
# ----------------------------------------------------------------------------
def _make_kernel(n_layers):
    def kernel(*refs):
        x_ref = refs[0]                                  # (BT, Cin*HW) bf16
        conv_refs = refs[1:1 + 2 * n_layers]             # (W_i, b_i) pairs
        wh_ref, bh_ref, wv2_ref, bv2_ref, out_ref = refs[1 + 2 * n_layers:]

        # ---- conv stack: each layer is one dense banded matmul + bias + ReLU ----
        h = x_ref[...]                                   # bf16 activations
        for li in range(n_layers):
            w_ref = conv_refs[2 * li]                    # (cin*HW, cout*HW) bf16
            b_ref = conv_refs[2 * li + 1]                # (1, cout*HW) f32
            z = jnp.dot(h, w_ref[...], preferred_element_type=jnp.float32)
            z = jnp.maximum(z + b_ref[...], 0.0)
            # TODO(synk): nn.Dropout(0.3) is identity in eval mode; no mask applied.
            h = z.astype(jnp.bfloat16)

        # ---- fused policy + value-hidden head: one lane-dense matmul ----
        head = jnp.dot(h, wh_ref[...], preferred_element_type=jnp.float32)
        head = head + bh_ref[...]                        # (BT, 128) f32

        # value output layer (50 -> 1) as a VPU dot-reduce; wv2 is zero outside
        # the value-hidden columns, so policy slots do not leak in.
        relu_h = jnp.maximum(head, 0.0)
        value = jnp.sum(relu_h * wv2_ref[...], axis=-1, keepdims=True)
        value = value + bv2_ref[...]                     # (BT, 1)

        lane = jax.lax.broadcasted_iota(jnp.int32, head.shape, 1)
        out = jnp.where(lane < P_OUT, head, 0.0)         # lanes 0..3: policy logits
        out = jnp.where(lane == P_OUT, value, out)       # lane 4: value
        out_ref[...] = out.astype(out_ref.dtype)

    return kernel


def gw_ac_forward(x_nchw, kp, block_b=128):
    """x_nchw: (B, 4, H, W); kp: kernel-ready params from prepare_params()."""
    B = x_nchw.shape[0]
    H = W = kp["size"]
    hw = H * W
    cin = kp["channels"][0]
    feat_in = cin * hw
    n_layers = len(kp["channels"]) - 1

    # torch's NCHW flatten order == the kernel's lane order -> a free reshape,
    # no transpose, no wrapper-side padding.
    x_flat = x_nchw.reshape(B, feat_in).astype(jnp.bfloat16)

    bt = min(_round_up(block_b, 8), _round_up(B, 8))     # full sublane tiles
    b_pad = _round_up(B, bt)
    if b_pad != B:
        x_flat = jnp.pad(x_flat, ((0, b_pad - B), (0, 0)))
    grid = (b_pad // bt,)

    in_specs = [pl.BlockSpec((bt, feat_in), lambda i: (i, 0))]
    args = [x_flat]
    for w, b in kp["layers"]:
        in_specs.append(pl.BlockSpec(w.shape, lambda i: (0, 0)))   # VMEM-resident
        in_specs.append(pl.BlockSpec(b.shape, lambda i: (0, 0)))
        args.extend([w, b])
    for name in ("wh", "bh", "wv2", "bv2"):
        arr = kp[name]
        in_specs.append(pl.BlockSpec(arr.shape, lambda i: (0, 0)))
        args.append(arr)

    out = pl.pallas_call(
        _make_kernel(n_layers),
        out_shape=jax.ShapeDtypeStruct((b_pad, N_LANES), jnp.float32),
        grid=grid,
        in_specs=in_specs,
        out_specs=pl.BlockSpec((bt, N_LANES), lambda i: (i, 0)),
        compiler_params=pltpu.CompilerParams(
            dimension_semantics=("parallel",)),
    )(*args)

    return out[:B, :P_OUT], out[:B, P_OUT:P_OUT + 1]


# ----------------------------------------------------------------------------
# Parameters: torch-layout init + one-time repack into kernel-friendly layouts.
# ----------------------------------------------------------------------------
def init_params(key, size, units):
    """Torch-layout params: Conv2d OIHW + (Cout,), Linear (out, in) + (out,)."""
    params = {"convs": []}
    cins = [4] + list(units[:-1])
    for cin, cout in zip(cins, units):
        key, k1, k2 = jax.random.split(key, 3)
        bound = 1.0 / np.sqrt(cin * 9)
        w = jax.random.uniform(k1, (cout, cin, 3, 3), jnp.float32, -bound, bound)
        b = jax.random.uniform(k2, (cout,), jnp.float32, -bound, bound)
        params["convs"].append((w, b))

    feat = size * size * units[-1]

    def lin_init(k, fin, fout):
        k1, k2 = jax.random.split(k)
        bound = 1.0 / np.sqrt(fin)
        w = jax.random.uniform(k1, (fout, fin), jnp.float32, -bound, bound)
        b = jax.random.uniform(k2, (fout,), jnp.float32, -bound, bound)
        return w, b

    key, kpol, kv1, kv2 = jax.random.split(key, 4)
    params["policy"] = lin_init(kpol, feat, P_OUT)
    params["value1"] = lin_init(kv1, feat, V_HID)
    params["value2"] = lin_init(kv2, V_HID, 1)
    return params


def prepare_params(params, size, units):
    """One-time host-side repack:
      * each 3x3 conv (padding=1) -> banded (cin*HW, cout*HW) matrix with the
        zero-padding boundary baked in (bf16);
      * per-channel conv bias -> broadcast to (1, cout*HW) f32;
      * policy + value-hidden heads -> one lane-padded (feat, 128) bf16 matrix
        whose row order is exactly torch's NCHW flatten(1) order.
    """
    H = W = size
    hw = H * W
    channels = [4] + list(units)
    c_last = channels[-1]
    feat = c_last * hw

    kp = {"size": size, "channels": channels, "layers": []}

    for w, b in params["convs"]:
        w_np = np.asarray(w, np.float32)                 # (cout, cin, 3, 3)
        cout, cin = w_np.shape[0], w_np.shape[1]
        bw = np.zeros((cin * hw, cout * hw), np.float32)
        ci_rows = np.arange(cin) * hw
        co_cols = np.arange(cout) * hw
        for ky in range(3):
            for kx in range(3):
                tap = w_np[:, :, ky, kx].T               # (cin, cout)
                for ho in range(H):
                    hi = ho + ky - 1
                    if hi < 0 or hi >= H:
                        continue
                    for wo in range(W):
                        wi = wo + kx - 1
                        if wi < 0 or wi >= W:
                            continue
                        p_in = hi * W + wi
                        p_out = ho * W + wo
                        bw[np.ix_(ci_rows + p_in, co_cols + p_out)] = tap
        b_flat = np.repeat(np.asarray(b, np.float32), hw)[None, :]
        kp["layers"].append((jnp.asarray(bw, jnp.bfloat16),
                             jnp.asarray(b_flat, jnp.float32)))

    pw, pb = params["policy"]     # (4, feat), (4,)   feat columns in NCHW order
    v1w, v1b = params["value1"]   # (50, feat), (50,)
    v2w, v2b = params["value2"]   # (1, 50), (1,)

    assert P_OUT + V_HID <= N_LANES
    wh = np.zeros((feat, N_LANES), np.float32)
    wh[:, :P_OUT] = np.asarray(pw, np.float32).T
    wh[:, P_OUT:P_OUT + V_HID] = np.asarray(v1w, np.float32).T

    bh = np.zeros((1, N_LANES), np.float32)
    bh[0, :P_OUT] = np.asarray(pb, np.float32)
    bh[0, P_OUT:P_OUT + V_HID] = np.asarray(v1b, np.float32)

    wv2 = np.zeros((1, N_LANES), np.float32)
    wv2[0, P_OUT:P_OUT + V_HID] = np.asarray(v2w, np.float32)[0]
    bv2 = np.asarray(v2b, np.float32).reshape(1, 1)

    # Head-packing invariants the kernel's value computation relies on.
    assert np.all(wv2[0, :P_OUT] == 0.0) and np.all(wv2[0, P_OUT + V_HID:] == 0.0)
    assert np.all(wh[:, P_OUT + V_HID:] == 0.0) and np.all(bh[0, P_OUT + V_HID:] == 0.0)

    kp.update(wh=jnp.asarray(wh, jnp.bfloat16),
              bh=jnp.asarray(bh, jnp.float32),
              wv2=jnp.asarray(wv2, jnp.float32),
              bv2=jnp.asarray(bv2, jnp.float32))
    return kp


# ----------------------------------------------------------------------------
# Pure-JAX reference (matches the torch module) for a correctness check.
# ----------------------------------------------------------------------------
def reference_forward(x_nchw, params):
    hi = jax.lax.Precision.HIGHEST
    y = x_nchw.astype(jnp.float32)
    for w, b in params["convs"]:
        y = jax.lax.conv_general_dilated(
            y, w, window_strides=(1, 1), padding="SAME",
            dimension_numbers=("NCHW", "OIHW", "NCHW"), precision=hi)
        y = jnp.maximum(y + b.reshape(1, -1, 1, 1), 0.0)
    f = y.reshape(y.shape[0], -1)                        # torch x.flatten(1)
    pw, pb = params["policy"]
    v1w, v1b = params["value1"]
    v2w, v2b = params["value2"]
    policy = jnp.dot(f, pw.T, precision=hi) + pb
    h = jnp.maximum(jnp.dot(f, v1w.T, precision=hi) + v1b, 0.0)
    value = jnp.dot(h, v2w.T, precision=hi) + v2b
    return policy, value


if __name__ == "__main__":
    size = 8
    units = [8, 16]          # first conv: 4 -> 8, hidden conv: 8 -> 16
    batch = 12

    key = jax.random.PRNGKey(0)
    key, kx = jax.random.split(key)
    x = jax.random.normal(kx, (batch, 4, size, size), dtype=jnp.float32)

    params = init_params(key, size, units)
    kp = prepare_params(params, size, units)

    # block_b=8 -> batch tile of 8 and a 2-step grid (exercises multi-step path
    # and the batch-padding logic; larger deployments would use block_b=128).
    policy, value = gw_ac_forward(x, kp, block_b=8)
    jax.block_until_ready((policy, value))

    assert policy.shape == (batch, P_OUT)
    assert value.shape == (batch, 1)

    # sanity check vs. pure-JAX reference (loose tol: bf16 operands on the MXU).
    ref_p, ref_v = reference_forward(x, params)
    assert jnp.allclose(policy, ref_p, rtol=4e-2, atol=4e-2), (
        float(jnp.max(jnp.abs(policy - ref_p))))
    assert jnp.allclose(value, ref_v, rtol=4e-2, atol=4e-2), (
        float(jnp.max(jnp.abs(value - ref_v))))

    print("KERNEL_OK")
</pallas_src>

<mosaic_0001>
module attributes {stable_mosaic.version = 11 : i64} {
  func.func @kernel(%arg0: i32, %arg1: memref<8x256xbf16, #tpu.memory_space<vmem>>, %arg2: memref<256x512xbf16, #tpu.memory_space<vmem>>, %arg3: memref<1x512xf32, #tpu.memory_space<vmem>>, %arg4: memref<512x1024xbf16, #tpu.memory_space<vmem>>, %arg5: memref<1x1024xf32, #tpu.memory_space<vmem>>, %arg6: memref<1024x128xbf16, #tpu.memory_space<vmem>>, %arg7: memref<1x128xf32, #tpu.memory_space<vmem>>, %arg8: memref<1x128xf32, #tpu.memory_space<vmem>>, %arg9: memref<1x1xf32, #tpu.memory_space<vmem>>, %arg10: memref<8x128xf32, #tpu.memory_space<vmem>>) attributes {dimension_semantics = [#tpu.dimension_semantics<parallel>], iteration_bounds = array<i64: 2>, scalar_prefetch = 0 : i64, scratch_operands = 0 : i64, tpu.core_type = #tpu.core_type<tc>, window_params = [{transform_indices = @transform_0, window_bounds = array<i64: 8, 256>}, {pipeline_mode = #tpu.pipeline_mode<synchronous>, transform_indices = @transform_1, window_bounds = array<i64: 256, 512>}, {pipeline_mode = #tpu.pipeline_mode<synchronous>, transform_indices = @transform_2, window_bounds = array<i64: 1, 512>}, {pipeline_mode = #tpu.pipeline_mode<synchronous>, transform_indices = @transform_3, window_bounds = array<i64: 512, 1024>}, {pipeline_mode = #tpu.pipeline_mode<synchronous>, transform_indices = @transform_4, window_bounds = array<i64: 1, 1024>}, {pipeline_mode = #tpu.pipeline_mode<synchronous>, transform_indices = @transform_5, window_bounds = array<i64: 1024, 128>}, {pipeline_mode = #tpu.pipeline_mode<synchronous>, transform_indices = @transform_6, window_bounds = array<i64: 1, 128>}, {pipeline_mode = #tpu.pipeline_mode<synchronous>, transform_indices = @transform_7, window_bounds = array<i64: 1, 128>}, {pipeline_mode = #tpu.pipeline_mode<synchronous>, transform_indices = @transform_8, window_bounds = array<i64: 1, 1>}, {transform_indices = @transform_9, window_bounds = array<i64: 8, 128>}]} {
    %c0 = arith.constant 0 : index
    %c0_0 = arith.constant 0 : index
    %0 = vector.load %arg1[%c0, %c0_0] : memref<8x256xbf16, #tpu.memory_space<vmem>>, vector<8x256xbf16>
    %c0_1 = arith.constant 0 : index
    %c0_2 = arith.constant 0 : index
    %1 = vector.load %arg2[%c0_1, %c0_2] : memref<256x512xbf16, #tpu.memory_space<vmem>>, vector<256x512xbf16>
    %cst = arith.constant dense<0.000000e+00> : vector<8x512xf32>
    %2 = tpu.matmul %0, %1, %cst {dimension_numbers = #tpu.dot_dimension_numbers<[1], [0], [0], [1], [0, 0, 1, 1], [], []>} : vector<8x256xbf16>, vector<256x512xbf16>, vector<8x512xf32> -> vector<8x512xf32>
    %c0_3 = arith.constant 0 : index
    %c0_4 = arith.constant 0 : index
    %3 = vector.load %arg3[%c0_3, %c0_4] : memref<1x512xf32, #tpu.memory_space<vmem>>, vector<1x512xf32>
    %4 = vector.broadcast %3 : vector<1x512xf32> to vector<8x512xf32>
    %5 = arith.addf %2, %4 : vector<8x512xf32>
    %cst_5 = arith.constant 0.000000e+00 : f32
    %6 = vector.broadcast %cst_5 : f32 to vector<8x512xf32>
    %7 = arith.maximumf %5, %6 : vector<8x512xf32>
    %8 = arith.truncf %7 : vector<8x512xf32> to vector<8x512xbf16>
    %c0_6 = arith.constant 0 : index
    %c0_7 = arith.constant 0 : index
    %9 = vector.load %arg4[%c0_6, %c0_7] : memref<512x1024xbf16, #tpu.memory_space<vmem>>, vector<512x1024xbf16>
    %cst_8 = arith.constant dense<0.000000e+00> : vector<8x1024xf32>
    %10 = tpu.matmul %8, %9, %cst_8 {dimension_numbers = #tpu.dot_dimension_numbers<[1], [0], [0], [1], [0, 0, 1, 1], [], []>} : vector<8x512xbf16>, vector<512x1024xbf16>, vector<8x1024xf32> -> vector<8x1024xf32>
    %c0_9 = arith.constant 0 : index
    %c0_10 = arith.constant 0 : index
    %11 = vector.load %arg5[%c0_9, %c0_10] : memref<1x1024xf32, #tpu.memory_space<vmem>>, vector<1x1024xf32>
    %12 = vector.broadcast %11 : vector<1x1024xf32> to vector<8x1024xf32>
    %13 = arith.addf %10, %12 : vector<8x1024xf32>
    %cst_11 = arith.constant 0.000000e+00 : f32
    %14 = vector.broadcast %cst_11 : f32 to vector<8x1024xf32>
    %15 = arith.maximumf %13, %14 : vector<8x1024xf32>
    %16 = arith.truncf %15 : vector<8x1024xf32> to vector<8x1024xbf16>
    %c0_12 = arith.constant 0 : index
    %c0_13 = arith.constant 0 : index
    %17 = vector.load %arg6[%c0_12, %c0_13] : memref<1024x128xbf16, #tpu.memory_space<vmem>>, vector<1024x128xbf16>
    %cst_14 = arith.constant dense<0.000000e+00> : vector<8x128xf32>
    %18 = tpu.matmul %16, %17, %cst_14 {dimension_numbers = #tpu.dot_dimension_numbers<[1], [0], [0], [1], [0, 0, 1, 1], [], []>} : vector<8x1024xbf16>, vector<1024x128xbf16>, vector<8x128xf32> -> vector<8x128xf32>
    %c0_15 = arith.constant 0 : index
    %c0_16 = arith.constant 0 : index
    %19 = vector.load %arg7[%c0_15, %c0_16] : memref<1x128xf32, #tpu.memory_space<vmem>>, vector<1x128xf32>
    %20 = vector.broadcast %19 : vector<1x128xf32> to vector<8x128xf32>
    %21 = arith.addf %18, %20 : vector<8x128xf32>
    %cst_17 = arith.constant 0.000000e+00 : f32
    %22 = vector.broadcast %cst_17 : f32 to vector<8x128xf32>
    %23 = arith.maximumf %21, %22 : vector<8x128xf32>
    %c0_18 = arith.constant 0 : index
    %c0_19 = arith.constant 0 : index
    %24 = vector.load %arg8[%c0_18, %c0_19] : memref<1x128xf32, #tpu.memory_space<vmem>>, vector<1x128xf32>
    %25 = vector.broadcast %24 : vector<1x128xf32> to vector<8x128xf32>
    %26 = arith.mulf %23, %25 : vector<8x128xf32>
    %cst_20 = arith.constant dense<0.000000e+00> : vector<8xf32>
    %27 = vector.multi_reduction <add>, %26, %cst_20 [1] : vector<8x128xf32> to vector<8xf32>
    %28 = vector.shape_cast %27 : vector<8xf32> to vector<8x1xf32>
    %c0_21 = arith.constant 0 : index
    %c0_22 = arith.constant 0 : index
    %29 = vector.load %arg9[%c0_21, %c0_22] : memref<1x1xf32, #tpu.memory_space<vmem>>, vector<1x1xf32>
    %30 = vector.broadcast %29 : vector<1x1xf32> to vector<8x1xf32>
    %31 = arith.addf %28, %30 : vector<8x1xf32>
    %32 = tpu.iota {dimensions = array<i32: 1>} : vector<8x128xi32>
    %c4_i32 = arith.constant 4 : i32
    %33 = vector.broadcast %c4_i32 : i32 to vector<8x128xi32>
    %34 = arith.cmpi slt, %32, %33 : vector<8x128xi32>
    %cst_23 = arith.constant 0.000000e+00 : f32
    %35 = vector.broadcast %cst_23 : f32 to vector<8x128xf32>
    %36 = arith.select %34, %21, %35 : vector<8x128xi1>, vector<8x128xf32>
    %c4_i32_24 = arith.constant 4 : i32
    %37 = vector.broadcast %c4_i32_24 : i32 to vector<8x128xi32>
    %38 = arith.cmpi eq, %32, %37 : vector<8x128xi32>
    %39 = vector.shape_cast %31 : vector<8x1xf32> to vector<8x1xf32>
    %40 = vector.broadcast %39 : vector<8x1xf32> to vector<8x128xf32>
    %41 = arith.select %38, %40, %36 : vector<8x128xi1>, vector<8x128xf32>
    %c0_25 = arith.constant 0 : index
    %c0_26 = arith.constant 0 : index
    %42 = vector.load %arg10[%c0_25, %c0_26] : memref<8x128xf32, #tpu.memory_space<vmem>>, vector<8x128xf32>
    tpu.vector_store %arg10[%c0_25, %c0_26], %41 {strides = array<i32>} : memref<8x128xf32, #tpu.memory_space<vmem>>, vector<8x128xf32>,
    return
  }
  func.func @transform_0(%arg0: i32) -> (i32, i32) {
    %c0_i32 = arith.constant 0 : i32
    %c0_i32_0 = arith.constant 0 : i32
    return %arg0, %c0_i32 : i32, i32
  }
  func.func @transform_1(%arg0: i32) -> (i32, i32) {
    %c0_i32 = arith.constant 0 : i32
    %c0_i32_0 = arith.constant 0 : i32
    %c0_i32_1 = arith.constant 0 : i32
    return %c0_i32, %c0_i32_0 : i32, i32
  }
  func.func @transform_2(%arg0: i32) -> (i32, i32) {
    %c0_i32 = arith.constant 0 : i32
    %c0_i32_0 = arith.constant 0 : i32
    %c0_i32_1 = arith.constant 0 : i32
    return %c0_i32, %c0_i32_0 : i32, i32
  }
  func.func @transform_3(%arg0: i32) -> (i32, i32) {
    %c0_i32 = arith.constant 0 : i32
    %c0_i32_0 = arith.constant 0 : i32
    %c0_i32_1 = arith.constant 0 : i32
    return %c0_i32, %c0_i32_0 : i32, i32
  }
  func.func @transform_4(%arg0: i32) -> (i32, i32) {
    %c0_i32 = arith.constant 0 : i32
    %c0_i32_0 = arith.constant 0 : i32
    %c0_i32_1 = arith.constant 0 : i32
    return %c0_i32, %c0_i32_0 : i32, i32
  }
  func.func @transform_5(%arg0: i32) -> (i32, i32) {
    %c0_i32 = arith.constant 0 : i32
    %c0_i32_0 = arith.constant 0 : i32
    %c0_i32_1 = arith.constant 0 : i32
    return %c0_i32, %c0_i32_0 : i32, i32
  }
  func.func @transform_6(%arg0: i32) -> (i32, i32) {
    %c0_i32 = arith.constant 0 : i32
    %c0_i32_0 = arith.constant 0 : i32
    %c0_i32_1 = arith.constant 0 : i32
    return %c0_i32, %c0_i32_0 : i32, i32
  }
  func.func @transform_7(%arg0: i32) -> (i32, i32) {
    %c0_i32 = arith.constant 0 : i32
    %c0_i32_0 = arith.constant 0 : i32
    %c0_i32_1 = arith.constant 0 : i32
    return %c0_i32, %c0_i32_0 : i32, i32
  }
  func.func @transform_8(%arg0: i32) -> (i32, i32) {
    %c0_i32 = arith.constant 0 : i32
    %c0_i32_0 = arith.constant 0 : i32
    %c0_i32_1 = arith.constant 0 : i32
    return %c0_i32, %c0_i32_0 : i32, i32
  }
  func.func @transform_9(%arg0: i32) -> (i32, i32) {
    %c0_i32 = arith.constant 0 : i32
    %c0_i32_0 = arith.constant 0 : i32
    return %arg0, %c0_i32 : i32, i32
  }
}

</mosaic_0001>

<bundles_post_ra>
// kernel: tpu_custom_call.1
= control target key start
LH: loop header
LB: loop body
LE: loop exit
PB: predicated region body
PF: predicated region fallthrough
CT: control target
= control target key end

     0   :  { %s4977_s0 = inlined_call_operand.hbm [shape: bf16[16,256], index: 0, kind: input, shape index: {}]   ;;  %s4978_s1 = inlined_call_operand.hbm [shape: bf16[256,512], index: 1, kind: input, shape index: {}]   ;;  %s4979_s2 = inlined_call_operand.hbm [shape: f32[1,512], index: 2, kind: input, shape index: {}]   ;;  %s4980_s3 = inlined_call_operand.hbm [shape: bf16[512,1024], index: 3, kind: input, shape index: {}]   ;;  %s4981_s4 = inlined_call_operand.vmem [shape: f32[1,1024], index: 4, kind: input, shape index: {}]   ;;  %s4982_s5 = inlined_call_operand.hbm [shape: bf16[1024,128], index: 5, kind: input, shape index: {}]   ;;  %s4983_s6 = inlined_call_operand.vmem [shape: f32[1,128], index: 6, kind: input, shape index: {}]   ;;  %s4984_s7 = inlined_call_operand.vmem [shape: f32[1,128], index: 7, kind: input, shape index: {}]   ;;  %s4985_s8 = inlined_call_operand.<no memory space> [shape: f32[1,1], index: 8, kind: input, shape index: {}]   ;;  %s4986_s9 = inlined_call_operand.hbm [shape: f32[16,128], index: 9, kind: output, shape index: {}]  }
   0x1   :  { %4991 = sst [smem:[#allocation17_spill]] %s4978_s1  ;;  %v14_v0 = vstv %s4985_s8 }
   0x2   :  { %4992 = sst [smem:[#allocation18_spill]] %s4979_s2  ;;  %15 = vst [vmem:[#allocation2] sm:$0x1] %v14_v0 }
   0x3   :  { %4993 = sst [smem:[#allocation19_spill]] %s4980_s3 }
   0x4   :  { %16 = vsyncpa [#allocation4], 0 }
   0x5   :  { %18 = vsyncpa [#allocation4 + $0x1], 0 }
   0x6   :  { %19 = vsyncpa [#allocation7], 0 }
   0x7   :  { %20 = vsyncpa [#allocation10], 0 }
   0x8   :  { %21 = vsyncpa [#allocation5], 0 }
   0x9   :  { %23 = vsyncpa [#allocation5 + $0x1], 0  ;;  %s4694_s11 = smov 0   ;;  %s4696_s12 = smov 0  }
   0xa   :  { %s4698_s13 = smov 0   ;;  %s4700_s14 = smov 0  }
   0xb LB: > { %s4628_s8 = smov [#allocation6]   ;;  %s4715_s16 = sadd.s32 4294967295, %s4626_s14   ;;  %s4626_s14 = sphi %s4700_s14, %s5016_s14   ;;  %s4622_s13 = sphi %s4698_s13, %s5015_s13   ;;  %s4618_s12 = sphi %s4696_s12, %s5014_s12   ;;  %s4614_s11 = sphi %s4694_s11, %s5013_s11  }
   0xc   : > { %s266_s15 = sshll.u32 %s4628_s8, 4  ;;  %p3667_p0 = scmp.ge.s32.totalorder %s4626_s14, 1  ;;  %s267_s15 = int_to_ptr.vmem [resolvable:$true] %s266_s15 }
   0xd   : > { %p4987_p1 = scmp.eq.s32.totalorder %s4715_s16, 0  ;;  %p254_p2 = scmp.lt.s32.totalorder %s4626_s14, 3 }
   0xe   : > { %s4629_s18 = smov [#allocation9]   ;;  %s4630_s21 = smov [#allocation8]  }
   0xf   : > { %p4720_p3 = pnand %p3667_p0, %p254_p2  ;;  %s290_s19 = sshll.u32 %s4629_s18, 4  ;;  %s4733_s19 = int_to_ptr.vmem [resolvable:$true] %s290_s19 }
  0x10   : > { %s4735_s22 = sshll.u32 %s4630_s21, 4  ;;  %s4433_s23 = scalar_lea.vmem %s267_s15, 8192  ;;  %s281_s22 = int_to_ptr.vmem [resolvable:$true] %s4735_s22 }
  0x11   : > { %s4994_s17 = scalar_select %p4720_p3, 1, 0 }
  0x12   : > { %p4185_p5 = pneg %p4720_p3  ;;  %p4434_p8 = scmp.ne.s32.totalorder %s267_s15, %s4433_s23 }
  0x13   : > { %p4441_p11 = scmp.lt.s32.totalorder %s267_s15, %s267_s15  ;;  %p4442_p12 = scmp.lt.s32.totalorder %s4433_s23, %s4433_s23 }
  0x14   : > { %p4729_p6 = pnand %p4185_p5, %p4987_p1 }
  0x15   : > { %p4443_p13 = por %p4442_p12, %p4441_p11 }
  0x16   : > { %p4424_p7 = pneg %p4729_p6 }
  0x18   : > { %p4436_p9 = pnand %p4434_p8, %p4424_p7 }
  0x1a   : > { %p4437_p10 = pneg %p4436_p9 }
  0x1c   : > { %p4444_p0 = pnand %p4443_p13, %p4437_p10 }
  0x1e   : > { %4447 = shalt.err (!%p4444_p0)
}
  0x1f   : > { %s4631_s24 = smov 256   ;;  %s4632_s25 = smov 16  }
  0x20   : > { %s4996_s1 = sld [smem:[#allocation17_spill]]  ;;  %s4459_s28 = scalar_lea.vmem %s4733_s19, 32768 }
  0x21   : > { %p4460_p2 = scmp.ne.s32.totalorder %s4733_s19, %s4459_s28  ;;  %p4467_p9 = scmp.lt.s32.totalorder %s4733_s19, %s4733_s19 }
  0x22   : > { %p4468_p10 = scmp.lt.s32.totalorder %s4459_s28, %s4459_s28 }
  0x23   : > { %p4462_p5 = pnand %p4460_p2, %p4424_p7 }
  0x24   : > { %p4469_p11 = por %p4468_p10, %p4467_p9 }
  0x25   : > { %p4463_p8 = pneg %p4462_p5 }
  0x26   : > { %4188 = dma.hbm_to_vmem [thread:$0]  (!%p4729_p6), %s4996_s1, 8192, %s267_s15, [#allocation7], %s4631_s24, %s4631_s24, %s4632_s25  }
  0x27   : > { %p4470_p12 = pnand %p4469_p11, %p4463_p8 }
  0x29   : > { %4473 = shalt.err (!%p4470_p12)
}
  0x2a   : > { %s4633_s29 = smov 512   ;;  %s4634_s30 = smov 32  }
  0x2b   : > { %s4997_s3 = sld [smem:[#allocation19_spill]]  ;;  %s4485_s15 = scalar_lea.vmem %s281_s22, 64 }
  0x2c   : > { %p4486_p13 = scmp.ne.s32.totalorder %s281_s22, %s4485_s15  ;;  %p4493_p5 = scmp.lt.s32.totalorder %s281_s22, %s281_s22 }
  0x2d   : > { %p4494_p8 = scmp.lt.s32.totalorder %s4485_s15, %s4485_s15 }
  0x2e   : > { %p4488_p0 = pnand %p4486_p13, %p4424_p7 }
  0x2f   : > { %p4495_p9 = por %p4494_p8, %p4493_p5 }
  0x30   : > { %p4489_p2 = pneg %p4488_p0 }
  0x31   : > { %4194 = dma.hbm_to_vmem [thread:$0]  (!%p4729_p6), %s4997_s3, 32768, %s4733_s19, [#allocation10], %s4633_s29, %s4633_s29, %s4634_s30  }
  0x32   : > { %p4496_p10 = pnand %p4495_p9, %p4489_p2 }
  0x34   : > { %4499 = shalt.err (!%p4496_p10)
}
  0x35   : > { %s4998_s2 = sld [smem:[#allocation18_spill]]  ;;  %s4635_s19 = smov [#allocation11]  }
  0x36   : > { %s306_s23 = sshll.u32 %s4635_s19, 4  ;;  %s307_s23 = int_to_ptr.vmem [resolvable:$true] %s306_s23 }
  0x37   : > { %s4511_s24 = scalar_lea.vmem %s307_s23, 8192  ;;  %p4519_p0 = scmp.lt.s32.totalorder %s307_s23, %s307_s23 }
  0x38   : > { %p4512_p11 = scmp.ne.s32.totalorder %s307_s23, %s4511_s24  ;;  %p4520_p5 = scmp.lt.s32.totalorder %s4511_s24, %s4511_s24 }
  0x3a   : > { %p4514_p12 = pnand %p4512_p11, %p4424_p7  ;;  %p4521_p2 = por %p4520_p5, %p4519_p0 }
  0x3b   : > { %4191 = dma.hbm_to_vmem [thread:$0]  (!%p4729_p6), %s4998_s2, 64, %s281_s22, [#allocation7]  }
  0x3c   : > { %p4515_p13 = pneg %p4514_p12 }
  0x3e   : > { %p4522_p8 = pnand %p4521_p2, %p4515_p13 }
  0x40   : > { %4525 = shalt.err (!%p4522_p8)
}
  0x41   : > { %s4636_s25 = smov 64   ;;  %s4637_s22 = smov 4  }
  0x42   : > { %4197 = dma.hbm_to_vmem [thread:$0]  (!%p4729_p6), %s4982_s5, 8192, %s307_s23, [#allocation10], %s4636_s25, %s4636_s25, %s4637_s22  }
  0x43   : > { %s3666_s28 = sadd.s32 4294967294, %s4626_s14   ;;  %s4779_s29 = sadd.s32 1, %s4626_s14  }
  0x44   : > { %s33_s30 = ssub.s32 %s4626_s14, %s4779_s29  ;;  %s36_s10 = sadd.s32 1, %s4622_s13 }
  0x45   : > { %p34_p7 = scmp.eq.s32.totalorder %s33_s30, 0  ;;  %p43_p9 = scmp.ne.s32.totalorder %s4622_s13, %s4618_s12 }
  0x46   : > { %p44_p10 = scmp.eq.s32.totalorder %s4626_s14, 0  ;;  %p49_p11 = scmp.ne.s32.totalorder %s4618_s12, %s4614_s11 }
  0x47   : > { %s4790_s8 = scalar_select %p34_p7, %s4622_s13, %s36_s10  }
  0x48   : > { %p4792_p12 = por %p44_p10, %p43_p9  ;;  %p4798_p6 = por %p4987_p1, %p49_p11 }
  0x49   : > { %p241_p13 = scmp.eq.s32.totalorder %s4715_s16, 1  ;;  %p247_p0 = scmp.eq.s32.totalorder %s3666_s28, 1 }
  0x4a   : > { %s5000_s15 = scalar_select %p4798_p6, 1, 0 }
  0x4b   : > { %p4210_p5 = scmp.lt.s32.totalorder %s4626_s14, 2  ;;  %s329_s18 = sand.u32 1, %s4622_s13  }
  0x4c   : > { %p4805_p2 = por %p241_p13, %p43_p9  ;;  %p4809_p8 = por %p247_p0, %p49_p11 }
  0x4d   : > { %s3673_s23 = sshll.u32 %s329_s18, 3  ;;  %s4076_s24 = sshll.u32 %s4626_s14, 7 }
  0x4e   : > { %s5001_s21 = scalar_select %p4805_p2, 1, 0 }
  0x4f   : > { %s5002_s19 = scalar_select %p4809_p8, 1, 0 }
  0x50   : > { %s4817_s26 = scalar_lea.hbm %s4977_s0, %s4076_s24  ;;  %s333_s27 = scalar_lea.vmem [#allocation3], %s3673_s23 }
  0x51   : > { %s341_s28 = sshll.u32 %s333_s27, 4  ;;  %p4821_p7 = pnand %p4210_p5, %p4792_p12  ;;  %s342_s28 = int_to_ptr.vmem [resolvable:$true] %s341_s28 }
  0x52   : > { %s330_s10 = scalar_lea.sflag [#allocation4], %s329_s18  ;;  %s4526_s1 = scalar_lea.hbm %s4817_s26, 128 }
  0x53   : > { %p4527_p9 = scmp.ne.s32.totalorder %s4817_s26, %s4526_s1  ;;  %p4528_p10 = pneg %p4821_p7 }
  0x54   : > { %s4531_s22 = scalar_lea.hbm %s4977_s0, 256  ;;  %p4532_p0 = scmp.lt.s32.totalorder %s4817_s26, %s4977_s0 }
  0x55   : > { %p4529_p11 = pnand %p4528_p10, %p4527_p9  ;;  %p4533_p12 = scmp.lt.s32.totalorder %s4531_s22, %s4526_s1 }
  0x57   : > { %p4530_p13 = pneg %p4529_p11  ;;  %p4534_p5 = por %p4533_p12, %p4532_p0 }
  0x59   : > { %p4535_p4 = pnand %p4534_p5, %p4530_p13 }
  0x5b   : > { %4538 = shalt.err (!%p4535_p4)
}
  0x5c   : > { %s4539_s20 = scalar_lea.vmem %s342_s28, 128  ;;  %s4638_s18 = smov [#allocation3]  }
  0x5d   : > { %p4540_p1 = scmp.ne.s32.totalorder %s342_s28, %s4539_s20  ;;  %s4544_s2 = sshll.u32 %s4638_s18, 4  ;;  %s4545_s2 = int_to_ptr.vmem [resolvable:$false] %s4544_s2 }
  0x5e   : > { %s4546_s3 = scalar_lea.vmem %s4545_s2, 256  ;;  %p4547_p9 = scmp.lt.s32.totalorder %s342_s28, %s4545_s2 }
  0x5f   : > { %p4542_p8 = pnand %p4540_p1, %p4528_p10  ;;  %p4548_p11 = scmp.lt.s32.totalorder %s4546_s3, %s4539_s20 }
  0x61   : > { %p4543_p2 = pneg %p4542_p8  ;;  %p4549_p6 = por %p4548_p11, %p4547_p9 }
  0x63   : > { %p4550_p3 = pnand %p4549_p6, %p4543_p2 }
  0x65   : > { %4553 = shalt.err (!%p4550_p3)
}
  0x66   : > { %4201 = dma.hbm_to_vmem [thread:$0]  (!%p4821_p7), %s4817_s26, 128, %s342_s28, %s330_s10  }
  0x67   : > { %p5004_p13 = scmp.ne.s32.totalorder %s4994_s17, 0 }
  0x68   : > { %s4842_s1 = sand.u32 (!%p5004_p13), 1, %s4618_s12   ;;  %p5005_p1 = scmp.ne.s32.totalorder (!%p5004_p13), %s5000_s15, 0 }
  0x69   : > { %350 = sbr.rel (%p5004_p13) target bundleno = 1261 (0x4ed), region = 56  ;;  %s3677_s24 = sshll.u32 (!%p5004_p13), %s4842_s1, 3 }
  0x6a   : > { %s353_s2 = scalar_lea.sflag (!%p5004_p13), [#allocation4], %s4842_s1  ;;  %s4848_s3 = scalar_lea.vmem (!%p5004_p13), [#allocation3], %s3677_s24 }
  0x6e   : > { %4597 = dma.done.wait (%p5005_p1), %s353_s2, 128  }
  0x6f   : > { %4599 = vsyncadd (%p5005_p1), %s353_s2, 4294967168  ;;  %p5006_p3 = scmp.eq.s32.totalorder %s4715_s16, 0 }
  0x71   : > { %4601 = dma.done.wait (%p5006_p3), [#allocation7], 8256   ;;  %p5007_p4 = pmov %p5006_p3 }
  0x72   : > { %p5008_p6 = pmov %p5006_p3 }
  0x73   : > { %4603 = vsyncadd (%p5007_p4), [#allocation7], 4294959040 }
  0x74   : > { %4605 = dma.done.wait (%p5008_p6), [#allocation10], 40960   ;;  %p5009_p2 = pmov %p5006_p3 }
  0x75   : > { %v4260_v1 = vld [vmem:[#allocation6 + $0xe4] ss:$16 sps:$4 sm:$0xff]   ;;  %v4262_v2 = vld [vmem:[#allocation6 + $0xec] ss:$16 sps:$4 sm:$0xff]   ;;  %v4264_v3 = vld [vmem:[#allocation6 + $0xe0] ss:$16 sps:$4 sm:$0xff]  }
  0x76   : > { %4607 = vsyncadd (%p5009_p2), [#allocation10], 4294926336  ;;  %822 = vmatprep.subr.bf16.mxu0 %v4260_v1  ;;  %v4265_v4 = vld [vmem:[#allocation6 + $0xe8] ss:$16 sps:$4 sm:$0xff]   ;;  %863 = vmatprep.subr.bf16.mxu1 %v4262_v2  ;;  %v4266_v5 = vld [vmem:[#allocation6 + $0xc4] ss:$16 sps:$4 sm:$0xff]  }
  0x77   : > { %823 = vmatpush1.bf16.msra.mxu0 %v4264_v3  ;;  %864 = vmatpush1.bf16.msra.mxu1 %v4265_v4  ;;  %v4268_v6 = vld [vmem:[#allocation6 + $0xcc] ss:$16 sps:$4 sm:$0xff]   ;;  %v4270_v7 = vld [vmem:[#allocation6 + $0xc0] ss:$16 sps:$4 sm:$0xff]   ;;  %v4271_v8 = vld [vmem:[#allocation6 + $0xc8] ss:$16 sps:$4 sm:$0xff]  }
  0x78   : > { %824 = vmatprep.subr.bf16.mxu0 %v4266_v5  ;;  %865 = vmatprep.subr.bf16.mxu1 %v4268_v6  ;;  %v4272_v9 = vld [vmem:[#allocation6 + $0xa4] ss:$16 sps:$4 sm:$0xff]   ;;  %v4274_v10 = vld [vmem:[#allocation6 + $0xac] ss:$16 sps:$4 sm:$0xff]   ;;  %v4276_v11 = vld [vmem:[#allocation6 + $0xa0] ss:$16 sps:$4 sm:$0xff]  }
  0x79   : > { %v4277_v12 = vld [vmem:[#allocation6 + $0xa8] ss:$16 sps:$4 sm:$0xff]   ;;  %v4278_v13 = vld [vmem:[#allocation6 + $0x84] ss:$16 sps:$4 sm:$0xff]   ;;  %v4280_v14 = vld [vmem:[#allocation6 + $0x8c] ss:$16 sps:$4 sm:$0xff]  }
  0x7a   : > { %v4282_v15 = vld [vmem:[#allocation6 + $0x80] ss:$16 sps:$4 sm:$0xff]   ;;  %v4283_v16 = vld [vmem:[#allocation6 + $0x88] ss:$16 sps:$4 sm:$0xff]   ;;  %v4284_v17 = vld [vmem:[#allocation6 + $0x64] ss:$16 sps:$4 sm:$0xff]  }
  0x7b   : > { %825 = vmatpush1.bf16.msra.mxu0 %v4270_v7  ;;  %866 = vmatpush1.bf16.msra.mxu1 %v4271_v8  ;;  %v4286_v18 = vld [vmem:[#allocation6 + $0x6c] ss:$16 sps:$4 sm:$0xff]   ;;  %v4288_v19 = vld [vmem:[#allocation6 + $0x60] ss:$16 sps:$4 sm:$0xff]   ;;  %v4289_v20 = vld [vmem:[#allocation6 + $0x68] ss:$16 sps:$4 sm:$0xff]  }
  0x7c   : > { %826 = vmatprep.subr.bf16.mxu0 %v4272_v9  ;;  %867 = vmatprep.subr.bf16.mxu1 %v4274_v10  ;;  %v4290_v21 = vld [vmem:[#allocation6 + $0x44] ss:$16 sps:$4 sm:$0xff]   ;;  %v4292_v22 = vld [vmem:[#allocation6 + $0x4c] ss:$16 sps:$4 sm:$0xff]   ;;  %v4294_v23 = vld [vmem:[#allocation6 + $0x40] ss:$16 sps:$4 sm:$0xff]  }
  0x7d   : > { %v4295_v24 = vld [vmem:[#allocation6 + $0x48] ss:$16 sps:$4 sm:$0xff]   ;;  %v4296_v25 = vld [vmem:[#allocation6 + $0x24] ss:$16 sps:$4 sm:$0xff]   ;;  %v4298_v26 = vld [vmem:[#allocation6 + $0x2c] ss:$16 sps:$4 sm:$0xff]  }
  0x7e   : > { %v4300_v27 = vld [vmem:[#allocation6 + $0x20] ss:$16 sps:$4 sm:$0xff]   ;;  %v4301_v28 = vld [vmem:[#allocation6 + $0x28] ss:$16 sps:$4 sm:$0xff]   ;;  %v4302_v29 = vld [vmem:[#allocation6 + $0x4] ss:$16 sps:$4 sm:$0xff]  }
  0x7f   : > { %827 = vmatpush1.bf16.msra.mxu0 %v4276_v11  ;;  %868 = vmatpush1.bf16.msra.mxu1 %v4277_v12  ;;  %v4304_v30 = vld [vmem:[#allocation6 + $0xc] ss:$16 sps:$4 sm:$0xff]   ;;  %v4306_v31 = vld [vmem:[#allocation6] ss:$16 sps:$4 sm:$0xff]   ;;  %v4307_v32 = vld [vmem:[#allocation6 + $0x8] ss:$16 sps:$4 sm:$0xff]  }
  0x80   : > { %828 = vmatprep.subr.bf16.mxu0 %v4278_v13  ;;  %869 = vmatprep.subr.bf16.mxu1 %v4280_v14  ;;  %v4308_v33 = vld [vmem:[#allocation6 + $0x1e4] ss:$16 sps:$4 sm:$0xff]   ;;  %v4310_v34 = vld [vmem:[#allocation6 + $0x1ec] ss:$16 sps:$4 sm:$0xff]   ;;  %v4312_v35 = vld [vmem:[#allocation6 + $0x1e0] ss:$16 sps:$4 sm:$0xff]  }
  0x81   : > { %v4313_v36 = vld [vmem:[#allocation6 + $0x1e8] ss:$16 sps:$4 sm:$0xff]   ;;  %v4314_v37 = vld [vmem:[#allocation6 + $0x1c4] ss:$16 sps:$4 sm:$0xff]   ;;  %v4316_v38 = vld [vmem:[#allocation6 + $0x1cc] ss:$16 sps:$4 sm:$0xff]  }
  0x82   : > { %v4318_v39 = vld [vmem:[#allocation6 + $0x1c0] ss:$16 sps:$4 sm:$0xff]   ;;  %v4319_v40 = vld [vmem:[#allocation6 + $0x1c8] ss:$16 sps:$4 sm:$0xff]   ;;  %v4320_v41 = vld [vmem:[#allocation6 + $0x1a4] ss:$16 sps:$4 sm:$0xff]  }
  0x83   : > { %829 = vmatpush1.bf16.msra.mxu0 %v4282_v15  ;;  %870 = vmatpush1.bf16.msra.mxu1 %v4283_v16  ;;  %v4322_v42 = vld [vmem:[#allocation6 + $0x1ac] ss:$16 sps:$4 sm:$0xff]   ;;  %v4324_v43 = vld [vmem:[#allocation6 + $0x1a0] ss:$16 sps:$4 sm:$0xff]   ;;  %v4325_v44 = vld [vmem:[#allocation6 + $0x1a8] ss:$16 sps:$4 sm:$0xff]  }
  0x84   : > { %830 = vmatprep.subr.bf16.mxu0 %v4284_v17  ;;  %871 = vmatprep.subr.bf16.mxu1 %v4286_v18  ;;  %v4326_v45 = vld [vmem:[#allocation6 + $0x184] ss:$16 sps:$4 sm:$0xff]   ;;  %v4328_v46 = vld [vmem:[#allocation6 + $0x18c] ss:$16 sps:$4 sm:$0xff]   ;;  %v4330_v49 = vld [vmem:[#allocation6 + $0x180] ss:$16 sps:$4 sm:$0xff]  }
  0x85   : > { %v408_v47 = vld [vmem:[%s4848_s3] sm:$0xff]  ;;  %v968_v1 = vld [vmem:[#allocation9 + $0x1c0] sm:$0xff]  ;;  %s4073_s25 = sshll.u32 %s4715_s16, 7  ;;  %s406_s22 = scalar_lea.vmem [#allocation12], %s3677_s24 }
  0x86   : > { %v3684_v48 = vcombine.high %v408_v47, %v408_v47  ;;  %v4331_v50 = vld [vmem:[#allocation6 + $0x188] ss:$16 sps:$4 sm:$0xff]   ;;  %v4332_v51 = vld [vmem:[#allocation6 + $0x164] ss:$16 sps:$4 sm:$0xff]   ;;  %v4334_v52 = vld [vmem:[#allocation6 + $0x16c] ss:$16 sps:$4 sm:$0xff]   ;;  %v3683_v13 = vcombine.low %v408_v47, %v408_v47  ;;  %s4940_s18 = scalar_lea.hbm %s4986_s9, %s4073_s25 }
  0x87   : > { %831 = vmatpush1.bf16.msra.mxu0 %v4288_v19  ;;  %872 = vmatpush1.bf16.msra.mxu1 %v4289_v20  ;;  %v4336_v53 = vld [vmem:[#allocation6 + $0x160] ss:$16 sps:$4 sm:$0xff]   ;;  %v4337_v54 = vld [vmem:[#allocation6 + $0x168] ss:$16 sps:$4 sm:$0xff]   ;;  %v4338_v55 = vld [vmem:[#allocation6 + $0x144] ss:$16 sps:$4 sm:$0xff]  }
  0x88   : > { %832 = vmatprep.subr.bf16.mxu0 %v4290_v21  ;;  %873 = vmatprep.subr.bf16.mxu1 %v4292_v22  ;;  %v4340_v56 = vld [vmem:[#allocation6 + $0x14c] ss:$16 sps:$4 sm:$0xff]   ;;  %v4342_v57 = vld [vmem:[#allocation6 + $0x140] ss:$16 sps:$4 sm:$0xff]   ;;  %v4343_v58 = vld [vmem:[#allocation6 + $0x148] ss:$16 sps:$4 sm:$0xff]  }
  0x89   : > { %854 = vmatprep.mubr.bf16.mxu0 %v3684_v48  ;;  %895 = vmatprep.mubr.bf16.mxu1 %v3684_v48  ;;  %v4344_v59 = vld [vmem:[#allocation6 + $0x124] ss:$16 sps:$4 sm:$0xff]   ;;  %v4346_v60 = vld [vmem:[#allocation6 + $0x12c] ss:$16 sps:$4 sm:$0xff]   ;;  %v4348_v61 = vld [vmem:[#allocation6 + $0x120] ss:$16 sps:$4 sm:$0xff]  }
  0x8a   : > { %v4349_v62 = vld [vmem:[#allocation6 + $0x128] ss:$16 sps:$4 sm:$0xff]   ;;  %v4350_v63 = vld [vmem:[#allocation6 + $0x104] ss:$16 sps:$4 sm:$0xff]   ;;  %v4352_v0 = vld [vmem:[#allocation6 + $0x10c] ss:$16 sps:$4 sm:$0xff]  }
  0x8b   : > { %833 = vmatpush1.bf16.msra.mxu0 %v4294_v23  ;;  %874 = vmatpush1.bf16.msra.mxu1 %v4295_v24  ;;  %v972_v2 = vld [vmem:[#allocation9 + $0x1e0] sm:$0xff]  ;;  %v4354_v5 = vld [vmem:[#allocation6 + $0x100] ss:$16 sps:$4 sm:$0xff]   ;;  %s3558_s23 = sshll.u32 %s406_s22, 4  ;;  %s3545_s2 = scalar_lea.sflag [#allocation5], %s4842_s1  ;;  %s3559_s23 = int_to_ptr.vmem [resolvable:$true] %s3558_s23 }
  0x8c   : > { %834 = vmatprep.subr.bf16.mxu0 %v4296_v25  ;;  %875 = vmatprep.subr.bf16.mxu1 %v4298_v26  ;;  %v1096_v3 = vld [vmem:[#allocation9 + $0x5c0] sm:$0xff]  ;;  %v3806_v8 = vcombine.high %v968_v1, %v972_v2  ;;  %v3805_v14 = vcombine.low %v968_v1, %v972_v2  ;;  %s4554_s3 = scalar_lea.vmem %s3559_s23, 128  ;;  %p5010_p7 = scmp.ne.s32.totalorder %s5001_s21, 0 }
  0x8d   : > { %v1100_v4 = vld [vmem:[#allocation9 + $0x5e0] sm:$0xff]  ;;  %p4555_p8 = scmp.ne.s32.totalorder %s3559_s23, %s4554_s3  ;;  %s4640_s16 = smov [#allocation12]  }
  0x8e   : > { %v4355_v6 = vld [vmem:[#allocation6 + $0x108] ss:$16 sps:$4 sm:$0xff]   ;;  %v3934_v9 = vcombine.high %v1096_v3, %v1100_v4  ;;  %v3933_v15 = vcombine.low %v1096_v3, %v1100_v4  ;;  %s4558_s24 = sshll.u32 %s4640_s16, 4  ;;  %s4559_s24 = int_to_ptr.vmem [resolvable:$false] %s4558_s24 }
  0x8f   : > { %835 = vmatpush1.bf16.msra.mxu0 %v4300_v27  ;;  %876 = vmatpush1.bf16.msra.mxu1 %v4301_v28  ;;  %v960_v7 = vld [vmem:[#allocation9 + $0x180] sm:$0xff]  ;;  %p4556_p10 = pnand %p4555_p8, %p5010_p7  ;;  %s4560_s17 = scalar_lea.vmem %s4559_s24, 256 }
  0x90   : > { %836 = vmatprep.subr.bf16.mxu0 %v4302_v29  ;;  %877 = vmatprep.subr.bf16.mxu1 %v4304_v30  ;;  %v964_v10 = vld [vmem:[#allocation9 + $0x1a0] sm:$0xff]  ;;  %p4561_p12 = scmp.lt.s32.totalorder %s3559_s23, %s4559_s24  ;;  %p4562_p5 = scmp.lt.s32.totalorder %s4560_s17, %s4554_s3 }
  0x91   : > { %v1088_v11 = vld [vmem:[#allocation9 + $0x580] sm:$0xff]  ;;  %v3798_v20 = vcombine.high %v960_v7, %v964_v10  ;;  %v3797_v22 = vcombine.low %v960_v7, %v964_v10  ;;  %p4557_p0 = pneg %p4556_p10 }
  0x92   : > { %v1092_v12 = vld [vmem:[#allocation9 + $0x5a0] sm:$0xff]  ;;  %p4563_p9 = por %p4562_p5, %p4561_p12 }
  0x93   : > { %837 = vmatpush1.bf16.msra.mxu0 %v4306_v31  ;;  %878 = vmatpush1.bf16.msra.mxu1 %v4307_v32  ;;  %v952_v16 = vld [vmem:[#allocation9 + $0x140] sm:$0xff]  ;;  %v3926_v21 = vcombine.high %v1088_v11, %v1092_v12  ;;  %v3925_v23 = vcombine.low %v1088_v11, %v1092_v12 }
  0x94   : > { %838 = vmatprep.subr.bf16.mxu0 %v4308_v33  ;;  %879 = vmatprep.subr.bf16.mxu1 %v4310_v34  ;;  %v956_v17 = vld [vmem:[#allocation9 + $0x160] sm:$0xff]  ;;  %p4564_p11 = pnand %p4563_p9, %p4557_p0 }
  0x95   : > { %v1080_v18 = vld [vmem:[#allocation9 + $0x540] sm:$0xff]  ;;  %v3790_v28 = vcombine.high %v952_v16, %v956_v17  ;;  %v3789_v30 = vcombine.low %v952_v16, %v956_v17 }
  0x96   : > { %v1084_v19 = vld [vmem:[#allocation9 + $0x560] sm:$0xff] }
  0x97   : > { %839 = vmatpush2.bf16.msra.mxu0 %v4312_v35  ;;  %880 = vmatpush2.bf16.msra.mxu1 %v4313_v36  ;;  %v944_v24 = vld [vmem:[#allocation9 + $0x100] sm:$0xff]  ;;  %v3918_v29 = vcombine.high %v1080_v18, %v1084_v19  ;;  %v3917_v31 = vcombine.low %v1080_v18, %v1084_v19 }
  0x98   : > { %840 = vmatprep.subr.bf16.mxu0 %v4314_v37  ;;  %881 = vmatprep.subr.bf16.mxu1 %v4316_v38  ;;  %v948_v25 = vld [vmem:[#allocation9 + $0x120] sm:$0xff] }
  0x99   : > { %v1072_v26 = vld [vmem:[#allocation9 + $0x500] sm:$0xff]  ;;  %v3782_v36 = vcombine.high %v944_v24, %v948_v25  ;;  %v3781_v38 = vcombine.low %v944_v24, %v948_v25 }
  0x9a   : > { %v1076_v27 = vld [vmem:[#allocation9 + $0x520] sm:$0xff] }
  0x9b   : > { %841 = vmatpush2.bf16.msra.mxu0 %v4318_v39  ;;  %882 = vmatpush2.bf16.msra.mxu1 %v4319_v40  ;;  %v936_v32 = vld [vmem:[#allocation9 + $0xc0] sm:$0xff]  ;;  %v3910_v37 = vcombine.high %v1072_v26, %v1076_v27  ;;  %v3909_v39 = vcombine.low %v1072_v26, %v1076_v27 }
  0x9c   : > { %842 = vmatprep.subr.bf16.mxu0 %v4320_v41  ;;  %883 = vmatprep.subr.bf16.mxu1 %v4322_v42  ;;  %v940_v33 = vld [vmem:[#allocation9 + $0xe0] sm:$0xff] }
  0x9d   : > { %v1064_v34 = vld [vmem:[#allocation9 + $0x4c0] sm:$0xff] }
  0x9e   : > { %v1068_v35 = vld [vmem:[#allocation9 + $0x4e0] sm:$0xff] }
  0x9f   : > { %843 = vmatpush2.bf16.msra.mxu0 %v4324_v43  ;;  %884 = vmatpush2.bf16.msra.mxu1 %v4325_v44  ;;  %v928_v40 = vld [vmem:[#allocation9 + $0x80] sm:$0xff]  ;;  %v3774_v44 = vcombine.high %v936_v32, %v940_v33  ;;  %v3901_v47 = vcombine.low %v1064_v34, %v1068_v35 }
  0xa0   : > { %844 = vmatprep.subr.bf16.mxu0 %v4326_v45  ;;  %885 = vmatprep.subr.bf16.mxu1 %v4328_v46  ;;  %v932_v41 = vld [vmem:[#allocation9 + $0xa0] sm:$0xff]  ;;  %v3902_v45 = vcombine.high %v1064_v34, %v1068_v35  ;;  %v3773_v46 = vcombine.low %v936_v32, %v940_v33 }
  0xa1   : > { %v1056_v42 = vld [vmem:[#allocation9 + $0x480] sm:$0xff] }
  0xa2   : > { %v1060_v43 = vld [vmem:[#allocation9 + $0x4a0] sm:$0xff] }
  0xa3   : > { %845 = vmatpush2.bf16.msra.mxu0 %v4330_v49  ;;  %886 = vmatpush2.bf16.msra.mxu1 %v4331_v50  ;;  %v920_v48 = vld [vmem:[#allocation9 + $0x40] sm:$0xff] }
  0xa4   : > { %846 = vmatprep.subr.bf16.mxu0 %v4332_v51  ;;  %887 = vmatprep.subr.bf16.mxu1 %v4334_v52  ;;  %v924_v49 = vld [vmem:[#allocation9 + $0x60] sm:$0xff]  ;;  %v3766_v52 = vcombine.high %v928_v40, %v932_v41 }
  0xa5   : > { %v1048_v50 = vld [vmem:[#allocation9 + $0x440] sm:$0xff] }
  0xa6   : > { %v1052_v51 = vld [vmem:[#allocation9 + $0x460] sm:$0xff] }
  0xa7   : > { %847 = vmatpush2.bf16.msra.mxu0 %v4336_v53  ;;  %888 = vmatpush2.bf16.msra.mxu1 %v4337_v54  ;;  %v3894_v53 = vcombine.high %v1056_v42, %v1060_v43  ;;  %v3765_v54 = vcombine.low %v928_v40, %v932_v41  ;;  %v1036_v1 = vld [vmem:[#allocation9 + $0x3e0] sm:$0xff] }
  0xa8   : > { %848 = vmatprep.subr.bf16.mxu0 %v4338_v55  ;;  %889 = vmatprep.subr.bf16.mxu1 %v4340_v56  ;;  %v3893_v55 = vcombine.low %v1056_v42, %v1060_v43  ;;  %v912_v56 = vld [vmem:[#allocation9] sm:$0xff] }
  0xa9   : > { %v1160_v2 = vld [vmem:[#allocation9 + $0x7c0] sm:$0xff] }
  0xaa   : > { %v1164_v3 = vld [vmem:[#allocation9 + $0x7e0] sm:$0xff] }
  0xab   : > { %849 = vmatpush2.bf16.msra.mxu0 %v4342_v57  ;;  %890 = vmatpush2.bf16.msra.mxu1 %v4343_v58  ;;  %v916_v57 = vld [vmem:[#allocation9 + $0x20] sm:$0xff] }
  0xac   : > { %850 = vmatprep.subr.bf16.mxu0 %v4344_v59  ;;  %891 = vmatprep.subr.bf16.mxu1 %v4346_v60  ;;  %v1040_v58 = vld [vmem:[#allocation9 + $0x400] sm:$0xff]  ;;  %v3758_v60 = vcombine.high %v920_v48, %v924_v49  ;;  %v3750_v4 = vcombine.high %v912_v56, %v916_v57 }
  0xad   : > { %v1044_v59 = vld [vmem:[#allocation9 + $0x420] sm:$0xff] }
  0xae   : > { %v3877_v7 = vcombine.low %v1040_v58, %v1044_v59  ;;  %v1152_v10 = vld [vmem:[#allocation9 + $0x780] sm:$0xff] }
  0xaf   : > { %851 = vmatpush2.bf16.msra.mxu0 %v4348_v61  ;;  %892 = vmatpush2.bf16.msra.mxu1 %v4349_v62  ;;  %v3886_v61 = vcombine.high %v1048_v50, %v1052_v51  ;;  %v3757_v62 = vcombine.low %v920_v48, %v924_v49  ;;  %v1156_v11 = vld [vmem:[#allocation9 + $0x7a0] sm:$0xff] }
  0xb0   : > { %852 = vmatprep.subr.bf16.mxu0 %v4350_v63  ;;  %893 = vmatprep.subr.bf16.mxu1 %v4352_v0  ;;  %v3885_v63 = vcombine.low %v1048_v50, %v1052_v51  ;;  %v1032_v0 = vld [vmem:[#allocation9 + $0x3c0] sm:$0xff] }
  0xb1   : > { %v3870_v12 = vcombine.high %v1032_v0, %v1036_v1  ;;  %v1016_v16 = vld [vmem:[#allocation9 + $0x340] sm:$0xff] }
  0xb2   : > { %v1020_v17 = vld [vmem:[#allocation9 + $0x360] sm:$0xff] }
  0xb3   : > { %853 = vmatpush2.bf16.msra.mxu0 %v4354_v5  ;;  %894 = vmatpush2.bf16.msra.mxu1 %v4355_v6  ;;  %v3878_v5 = vcombine.high %v1040_v58, %v1044_v59  ;;  %v3749_v6 = vcombine.low %v912_v56, %v916_v57  ;;  %v1144_v18 = vld [vmem:[#allocation9 + $0x740] sm:$0xff] }
  0xb4   : > { %2490 = vmatprep.subr.bf16.mxu0 %v3806_v8  ;;  %2531 = vmatprep.subr.bf16.mxu1 %v3934_v9  ;;  %v1024_v8 = vld [vmem:[#allocation9 + $0x380] sm:$0xff] }
  0xb5   : > { %v1028_v9 = vld [vmem:[#allocation9 + $0x3a0] sm:$0xff] }
  0xb6   : > { %855 = vmatmul.mubr.bf16.vlgmr.msra.gmra.mxu0 %v3683_v13  ;;  %896 = vmatmul.mubr.bf16.vlgmr.msra.gmra.mxu1 %v3683_v13  ;;  %v3998_v13 = vcombine.high %v1160_v2, %v1164_v3  ;;  %v1148_v19 = vld [vmem:[#allocation9 + $0x760] sm:$0xff] }
  0xb7   : > { %2491 = vmatpush1.bf16.msra.mxu0 %v3805_v14  ;;  %2532 = vmatpush1.bf16.msra.mxu1 %v3933_v15  ;;  %v3869_v14 = vcombine.low %v1032_v0, %v1036_v1  ;;  %v3997_v15 = vcombine.low %v1160_v2, %v1164_v3  ;;  %v1008_v24 = vld [vmem:[#allocation9 + $0x300] sm:$0xff] }
  0xb8   : > { %2492 = vmatprep.subr.bf16.mxu0 %v3798_v20  ;;  %2533 = vmatprep.subr.bf16.mxu1 %v3926_v21  ;;  %v3862_v20 = vcombine.high %v1024_v8, %v1028_v9  ;;  %v3990_v21 = vcombine.high %v1152_v10, %v1156_v11  ;;  %v1012_v25 = vld [vmem:[#allocation9 + $0x320] sm:$0xff] }
  0xb9   : > { %v1136_v26 = vld [vmem:[#allocation9 + $0x700] sm:$0xff]  ;;  %v3846_v32 = vcombine.high %v1008_v24, %v1012_v25 }
  0xba   : > { %v1140_v27 = vld [vmem:[#allocation9 + $0x720] sm:$0xff] }
  0xbb   : > { %2493 = vmatpush1.bf16.msra.mxu0 %v3797_v22  ;;  %2534 = vmatpush1.bf16.msra.mxu1 %v3925_v23  ;;  %v3861_v22 = vcombine.low %v1024_v8, %v1028_v9  ;;  %v3989_v23 = vcombine.low %v1152_v10, %v1156_v11  ;;  %v3974_v33 = vcombine.high %v1136_v26, %v1140_v27  ;;  %v1000_v34 = vld [vmem:[#allocation9 + $0x2c0] sm:$0xff]  ;;  %v1101_v8 = vld [vmem:[#allocation9 + $0x5e8] sm:$0xff] }
  0xbc   : > { %2494 = vmatprep.subr.bf16.mxu0 %v3790_v28  ;;  %2535 = vmatprep.subr.bf16.mxu1 %v3918_v29  ;;  %v3854_v28 = vcombine.high %v1016_v16, %v1020_v17  ;;  %v3982_v29 = vcombine.high %v1144_v18, %v1148_v19  ;;  %v1004_v35 = vld [vmem:[#allocation9 + $0x2e0] sm:$0xff] }
  0xbd   : > { %v3838_v40 = vcombine.high %v1000_v34, %v1004_v35  ;;  %v992_v42 = vld [vmem:[#allocation9 + $0x280] sm:$0xff] }
  0xbe   : > { %v996_v43 = vld [vmem:[#allocation9 + $0x2a0] sm:$0xff] }
  0xbf   : > { %2495 = vmatpush1.bf16.msra.mxu0 %v3789_v30  ;;  %2536 = vmatpush1.bf16.msra.mxu1 %v3917_v31  ;;  %v3853_v30 = vcombine.low %v1016_v16, %v1020_v17  ;;  %v3981_v31 = vcombine.low %v1144_v18, %v1148_v19  ;;  %v3830_v48 = vcombine.high %v992_v42, %v996_v43  ;;  %v1116_v56 = vld [vmem:[#allocation9 + $0x660] sm:$0xff]  ;;  %v473_v16 = vld [vmem:[#allocation8] sm:$0xf] }
  0xc0   : > { %2496 = vmatprep.subr.bf16.mxu0 %v3782_v36  ;;  %2537 = vmatprep.subr.bf16.mxu1 %v3910_v37  ;;  %v1128_v36 = vld [vmem:[#allocation9 + $0x6c0] sm:$0xff]  ;;  %v3829_v50 = vcombine.low %v992_v42, %v996_v43  ;;  %v1089_v42 = vld [vmem:[#allocation9 + $0x588] sm:$0xff] }
  0xc1   : > { %v1132_v37 = vld [vmem:[#allocation9 + $0x6e0] sm:$0xff]  ;;  %v1093_v43 = vld [vmem:[#allocation9 + $0x5a8] sm:$0xff] }
  0xc2   : > { %v3966_v41 = vcombine.high %v1128_v36, %v1132_v37  ;;  %v1108_v0 = vld [vmem:[#allocation9 + $0x620] sm:$0xff] }
  0xc3   : > { %2497 = vmatpush1.bf16.msra.mxu0 %v3781_v38  ;;  %2538 = vmatpush1.bf16.msra.mxu1 %v3909_v39  ;;  %v3845_v38 = vcombine.low %v1008_v24, %v1012_v25  ;;  %v3973_v39 = vcombine.low %v1136_v26, %v1140_v27 }
  0xc4   : > { %2498 = vmatprep.subr.bf16.mxu0 %v3774_v44  ;;  %2539 = vmatprep.subr.bf16.mxu1 %v3902_v45  ;;  %v1120_v44 = vld [vmem:[#allocation9 + $0x680] sm:$0xff] }
  0xc5   : > { %v1124_v45 = vld [vmem:[#allocation9 + $0x6a0] sm:$0xff] }
  0xc6   : > { %v3958_v49 = vcombine.high %v1120_v44, %v1124_v45  ;;  %v3957_v51 = vcombine.low %v1120_v44, %v1124_v45 }
  0xc7   : > { %2499 = vmatpush1.bf16.msra.mxu0 %v3773_v46  ;;  %2540 = vmatpush1.bf16.msra.mxu1 %v3901_v47  ;;  %v3837_v46 = vcombine.low %v1000_v34, %v1004_v35  ;;  %v3965_v47 = vcombine.low %v1128_v36, %v1132_v37  ;;  %v961_v37 = vld [vmem:[#allocation9 + $0x188] sm:$0xff] }
  0xc8   : > { %2500 = vmatprep.subr.bf16.mxu0 %v3766_v52  ;;  %2541 = vmatprep.subr.bf16.mxu1 %v3894_v53  ;;  %v984_v52 = vld [vmem:[#allocation9 + $0x240] sm:$0xff] }
  0xc9   : > { %v988_v53 = vld [vmem:[#allocation9 + $0x260] sm:$0xff] }
  0xca   : > { %v3821_v57 = vcombine.low %v984_v52, %v988_v53 }
  0xcb   : > { %2501 = vmatpush1.bf16.msra.mxu0 %v3765_v54  ;;  %2542 = vmatpush1.bf16.msra.mxu1 %v3893_v55  ;;  %v1112_v54 = vld [vmem:[#allocation9 + $0x640] sm:$0xff]  ;;  %v3822_v55 = vcombine.high %v984_v52, %v988_v53  ;;  %v1085_v52 = vld [vmem:[#allocation9 + $0x568] sm:$0xff] }
  0xcc   : > { %2502 = vmatprep.subr.bf16.mxu0 %v3758_v60  ;;  %2543 = vmatprep.subr.bf16.mxu1 %v3886_v61  ;;  %v3949_v58 = vcombine.low %v1112_v54, %v1116_v56  ;;  %v3950_v59 = vcombine.high %v1112_v54, %v1116_v56  ;;  %v976_v60 = vld [vmem:[#allocation9 + $0x200] sm:$0xff]  ;;  %v3927_v54 = vcombine.low %v1089_v42, %v1093_v43 }
  0xcd   : > { %v980_v61 = vld [vmem:[#allocation9 + $0x220] sm:$0xff] }
  0xce   : > { %v3813_v1 = vcombine.low %v976_v60, %v980_v61 }
  0xcf   : > { %2503 = vmatpush1.bf16.msra.mxu0 %v3757_v62  ;;  %2544 = vmatpush1.bf16.msra.mxu1 %v3885_v63  ;;  %v1104_v62 = vld [vmem:[#allocation9 + $0x600] sm:$0xff]  ;;  %v3814_v63 = vcombine.high %v976_v60, %v980_v61  ;;  %v1077_v60 = vld [vmem:[#allocation9 + $0x528] sm:$0xff] }
  0xd0   : > { %2504 = vmatprep.subr.bf16.mxu0 %v3750_v4  ;;  %2545 = vmatprep.subr.bf16.mxu1 %v3878_v5  ;;  %v3941_v2 = vcombine.low %v1104_v62, %v1108_v0  ;;  %v3942_v3 = vcombine.high %v1104_v62, %v1108_v0  ;;  %v969_v4 = vld [vmem:[#allocation9 + $0x1c8] sm:$0xff] }
  0xd1   : > { %v973_v5 = vld [vmem:[#allocation9 + $0x1e8] sm:$0xff] }
  0xd2   : > { %v3807_v9 = vcombine.low %v969_v4, %v973_v5 }
  0xd3   : > { %2505 = vmatpush1.bf16.msra.mxu0 %v3749_v6  ;;  %2546 = vmatpush1.bf16.msra.mxu1 %v3877_v7  ;;  %v1097_v6 = vld [vmem:[#allocation9 + $0x5c8] sm:$0xff]  ;;  %v3808_v7 = vcombine.high %v969_v4, %v973_v5 }
  0xd4   : > { %2506 = vmatprep.subr.bf16.mxu0 %v3870_v12  ;;  %2547 = vmatprep.subr.bf16.mxu1 %v3998_v13  ;;  %v3935_v10 = vcombine.low %v1097_v6, %v1101_v8  ;;  %v3936_v11 = vcombine.high %v1097_v6, %v1101_v8  ;;  %v475_v12 = vlaneseq  ;;  %v1069_v4 = vld [vmem:[#allocation9 + $0x4e8] sm:$0xff] }
  0xd6   : > { %v4864_v13 = vshrl.u32 %v475_v12, 7 }
  0xd7   : > { %2507 = vmatpush2.bf16.msra.mxu0 %v3869_v14  ;;  %2548 = vmatpush2.bf16.msra.mxu1 %v3997_v15 }
  0xd8   : > { %2508 = vmatprep.subr.bf16.mxu0 %v3862_v20  ;;  %2549 = vmatprep.subr.bf16.mxu1 %v3990_v21  ;;  %v477_v14 = vsub.s32 0, %v4864_v13  ;;  %v485_v15 = vsub.s32 2, %v4864_v13  ;;  %v481_v17 = vsub.s32 1, %v4864_v13  ;;  %v489_v18 = vsub.s32 3, %v4864_v13 }
  0xda   : > { %v478_v19 = vrot.slane %v473_v16, %v477_v14  ;;  %v486_v20 = vrot.slane %v473_v16, %v485_v15  ;;  %v482_v21 = vrot.slane %v473_v16, %v481_v17 }
  0xdb   : > { %2509 = vmatpush2.bf16.msra.mxu0 %v3861_v22  ;;  %2550 = vmatpush2.bf16.msra.mxu1 %v3989_v23  ;;  %v490_v22 = vrot.slane %v473_v16, %v489_v18  ;;  %v1061_v16 = vld [vmem:[#allocation9 + $0x4a8] sm:$0xff] }
  0xdc   : > { %2510 = vmatprep.subr.bf16.mxu0 %v3854_v28  ;;  %2551 = vmatprep.subr.bf16.mxu1 %v3982_v29 }
  0xdf   : > { %2511 = vmatpush2.bf16.msra.mxu0 %v3853_v30  ;;  %2552 = vmatpush2.bf16.msra.mxu1 %v3981_v31 }
  0xe0   : > { %2512 = vmatprep.subr.bf16.mxu0 %v3846_v32  ;;  %2553 = vmatprep.subr.bf16.mxu1 %v3974_v33 }
  0xe3   : > { %2513 = vmatpush2.bf16.msra.mxu0 %v3845_v38  ;;  %2554 = vmatpush2.bf16.msra.mxu1 %v3973_v39 }
  0xe4   : > { %2514 = vmatprep.subr.bf16.mxu0 %v3838_v40  ;;  %2555 = vmatprep.subr.bf16.mxu1 %v3966_v41  ;;  %v965_v41 = vld [vmem:[#allocation9 + $0x1a8] sm:$0xff] }
  0xe5   : > { %v3799_v53 = vcombine.low %v961_v37, %v965_v41 }
  0xe7   : > { %2515 = vmatpush2.bf16.msra.mxu0 %v3837_v46  ;;  %2556 = vmatpush2.bf16.msra.mxu1 %v3965_v47  ;;  %v953_v47 = vld [vmem:[#allocation9 + $0x148] sm:$0xff] }
  0xe8   : > { %2516 = vmatprep.subr.bf16.mxu0 %v3830_v48  ;;  %2557 = vmatprep.subr.bf16.mxu1 %v3958_v49  ;;  %v3800_v48 = vcombine.high %v961_v37, %v965_v41  ;;  %v3928_v49 = vcombine.high %v1089_v42, %v1093_v43  ;;  %v1037_v41 = vld [vmem:[#allocation9 + $0x3e8] sm:$0xff] }
  0xe9   : > { %v1161_v42 = vld [vmem:[#allocation9 + $0x7c8] sm:$0xff] }
  0xea   : > { %v1165_v43 = vld [vmem:[#allocation9 + $0x7e8] sm:$0xff] }
  0xeb   : > { %2517 = vmatpush2.bf16.msra.mxu0 %v3829_v50  ;;  %2558 = vmatpush2.bf16.msra.mxu1 %v3957_v51  ;;  %v957_v50 = vld [vmem:[#allocation9 + $0x168] sm:$0xff] }
  0xec   : > { %2518 = vmatprep.subr.bf16.mxu0 %v3822_v55  ;;  %2559 = vmatprep.subr.bf16.mxu1 %v3950_v59  ;;  %v1081_v51 = vld [vmem:[#allocation9 + $0x548] sm:$0xff]  ;;  %v3792_v55 = vcombine.high %v953_v47, %v957_v50  ;;  %v3791_v61 = vcombine.low %v953_v47, %v957_v50  ;;  %v4000_v50 = vcombine.high %v1161_v42, %v1165_v43 }
  0xed   : > { %v3920_v56 = vcombine.high %v1081_v51, %v1085_v52  ;;  %v1073_v59 = vld [vmem:[#allocation9 + $0x508] sm:$0xff]  ;;  %v3919_v62 = vcombine.low %v1081_v51, %v1085_v52 }
  0xee   : > { %v3912_v0 = vcombine.high %v1073_v59, %v1077_v60  ;;  %v3911_v6 = vcombine.low %v1073_v59, %v1077_v60  ;;  %v1025_v51 = vld [vmem:[#allocation9 + $0x388] sm:$0xff] }
  0xef   : > { %2519 = vmatpush2.bf16.msra.mxu0 %v3821_v57  ;;  %2560 = vmatpush2.bf16.msra.mxu1 %v3949_v58  ;;  %v945_v57 = vld [vmem:[#allocation9 + $0x108] sm:$0xff] }
  0xf0   : > { %2520 = vmatprep.subr.bf16.mxu0 %v3814_v63  ;;  %2561 = vmatprep.subr.bf16.mxu1 %v3942_v3  ;;  %v949_v58 = vld [vmem:[#allocation9 + $0x128] sm:$0xff] }
  0xf1   : > { %v3784_v63 = vcombine.high %v945_v57, %v949_v58  ;;  %v1065_v3 = vld [vmem:[#allocation9 + $0x4c8] sm:$0xff]  ;;  %v3783_v5 = vcombine.low %v945_v57, %v949_v58 }
  0xf2   : > { %v3904_v8 = vcombine.high %v1065_v3, %v1069_v4  ;;  %v1029_v52 = vld [vmem:[#allocation9 + $0x3a8] sm:$0xff] }
  0xf3   : > { %2521 = vmatpush2.bf16.msra.mxu0 %v3813_v1  ;;  %2562 = vmatpush2.bf16.msra.mxu1 %v3941_v2  ;;  %v937_v1 = vld [vmem:[#allocation9 + $0xc8] sm:$0xff]  ;;  %v3864_v57 = vcombine.high %v1025_v51, %v1029_v52 }
  0xf4   : > { %2572 = vmatprep.subr.bf16.mxu0 %v3808_v7  ;;  %2613 = vmatprep.subr.bf16.mxu1 %v3936_v11  ;;  %v941_v2 = vld [vmem:[#allocation9 + $0xe8] sm:$0xff] }
  0xf5   : > { %v3776_v7 = vcombine.high %v937_v1, %v941_v2  ;;  %v1057_v11 = vld [vmem:[#allocation9 + $0x488] sm:$0xff] }
  0xf6   : > { %v1017_v59 = vld [vmem:[#allocation9 + $0x348] sm:$0xff] }
  0xf7   : > { %v1021_v60 = vld [vmem:[#allocation9 + $0x368] sm:$0xff] }
 0x176   : > { %v856_v23 = vpop.f32.mrf.mxu0  ;;  %v897_v24 = vpop.f32.mrf.mxu1 }
 0x177   : > { %v857_v25 = vadd.f32 %v856_v23, %v478_v19  ;;  %v898_v26 = vadd.f32 %v897_v24, %v486_v20  ;;  %v3775_v19 = vcombine.low %v937_v1, %v941_v2  ;;  %v3903_v20 = vcombine.low %v1065_v3, %v1069_v4  ;;  %v921_v23 = vld [vmem:[#allocation9 + $0x48] sm:$0xff] }
 0x178   : > { %v858_v27 = vpop.f32.mrf.mxu0  ;;  %v899_v28 = vpop.f32.mrf.mxu1  ;;  %v925_v24 = vld [vmem:[#allocation9 + $0x68] sm:$0xff]  ;;  %v3856_v1 = vcombine.high %v1017_v59, %v1021_v60 }
 0x179   : > { %v906_v29 = vmax.f32 %v898_v26, 0.0  ;;  %v859_v30 = vadd.f32 %v858_v27, %v482_v21  ;;  %v900_v31 = vadd.f32 %v899_v28, %v490_v22  ;;  %v904_v32 = vmax.f32 %v857_v25, 0.0  ;;  %v1049_v25 = vld [vmem:[#allocation9 + $0x448] sm:$0xff] }
 0x17a   : > { %v860_v33 = vpop.f32.mrf.mxu0  ;;  %v901_v34 = vpop.f32.mrf.mxu1  ;;  %v3896_v22 = vcombine.high %v1057_v11, %v1061_v16  ;;  %v1053_v26 = vld [vmem:[#allocation9 + $0x468] sm:$0xff]  ;;  %v3895_v28 = vcombine.low %v1057_v11, %v1061_v16 }
 0x17b   : > { %v905_v35 = vmax.f32 %v859_v30, 0.0  ;;  %v907_v36 = vmax.f32 %v900_v31, 0.0  ;;  %v4878_v38 = vpack.c.bf16 %v906_v29, %v906_v29  ;;  %v4884_v46 = vpack.c.bf16 %v904_v32, %v904_v32  ;;  %v913_v31 = vld [vmem:[#allocation9 + $0x8] sm:$0xff] }
 0x17c   : > { %v861_v39 = vpop.f32.mrf.mxu0  ;;  %v902_v40 = vpop.f32.mrf.mxu1  ;;  %v3760_v29 = vcombine.high %v921_v23, %v925_v24  ;;  %v3888_v30 = vcombine.high %v1049_v25, %v1053_v26  ;;  %v917_v32 = vld [vmem:[#allocation9 + $0x28] sm:$0xff] }
 0x17d   : > { %v4880_v44 = vpack.c.bf16 %v905_v35, %v905_v35  ;;  %v4882_v45 = vpack.c.bf16 %v907_v36, %v907_v36  ;;  %v1041_v33 = vld [vmem:[#allocation9 + $0x408] sm:$0xff]  ;;  %v3759_v35 = vcombine.low %v921_v23, %v925_v24  ;;  %v3887_v36 = vcombine.low %v1049_v25, %v1053_v26 }
 0x17e   : > { %v1045_v34 = vld [vmem:[#allocation9 + $0x428] sm:$0xff]  ;;  %v3752_v37 = vcombine.high %v913_v31, %v917_v32  ;;  %v3751_v47 = vcombine.low %v913_v31, %v917_v32 }
 0x17f   : > { %2522 = vmatprep.mubr.bf16.mxu0 %v4880_v44  ;;  %2563 = vmatprep.mubr.bf16.mxu1 %v4882_v45  ;;  %v3880_v39 = vcombine.high %v1041_v33, %v1045_v34  ;;  %v1033_v40 = vld [vmem:[#allocation9 + $0x3c8] sm:$0xff] }
 0x180   : > { %2523 = vmatmul.mubr.bf16.vlgmr.msra.gmra.mxu0 %v4884_v46  ;;  %2564 = vmatmul.mubr.bf16.vlgmr.msra.gmra.mxu1 %v4878_v38  ;;  %v1009_v3 = vld [vmem:[#allocation9 + $0x308] sm:$0xff] }
 0x181   : > { %2573 = vmatpush1.bf16.msra.mxu0 %v3807_v9  ;;  %2614 = vmatpush1.bf16.msra.mxu1 %v3935_v10  ;;  %v929_v9 = vld [vmem:[#allocation9 + $0x88] sm:$0xff] }
 0x182   : > { %2604 = vmatprep.mubr.bf16.mxu0 %v4880_v44  ;;  %2645 = vmatprep.mubr.bf16.mxu1 %v4882_v45  ;;  %v933_v10 = vld [vmem:[#allocation9 + $0xa8] sm:$0xff] }
 0x183   : > { %2574 = vmatprep.subr.bf16.mxu0 %v3800_v48  ;;  %2615 = vmatprep.subr.bf16.mxu1 %v3928_v49  ;;  %v3768_v21 = vcombine.high %v929_v9, %v933_v10  ;;  %v3767_v27 = vcombine.low %v929_v9, %v933_v10  ;;  %v3879_v48 = vcombine.low %v1041_v33, %v1045_v34  ;;  %v1013_v4 = vld [vmem:[#allocation9 + $0x328] sm:$0xff] }
 0x184   : > { %v3872_v49 = vcombine.high %v1033_v40, %v1037_v41  ;;  %v3848_v9 = vcombine.high %v1009_v3, %v1013_v4  ;;  %v1001_v11 = vld [vmem:[#allocation9 + $0x2c8] sm:$0xff] }
 0x185   : > { %2575 = vmatpush1.bf16.msra.mxu0 %v3799_v53  ;;  %2616 = vmatpush1.bf16.msra.mxu1 %v3927_v54  ;;  %v1153_v53 = vld [vmem:[#allocation9 + $0x788] sm:$0xff] }
 0x186   : > { %2576 = vmatprep.subr.bf16.mxu0 %v3792_v55  ;;  %2617 = vmatprep.subr.bf16.mxu1 %v3920_v56  ;;  %v1157_v54 = vld [vmem:[#allocation9 + $0x7a8] sm:$0xff]  ;;  %v3871_v55 = vcombine.low %v1033_v40, %v1037_v41  ;;  %v3999_v56 = vcombine.low %v1161_v42, %v1165_v43 }
 0x187   : > { %v3992_v58 = vcombine.high %v1153_v53, %v1157_v54  ;;  %v1005_v16 = vld [vmem:[#allocation9 + $0x2e8] sm:$0xff] }
 0x188   : > { %v3840_v23 = vcombine.high %v1001_v11, %v1005_v16  ;;  %v993_v25 = vld [vmem:[#allocation9 + $0x288] sm:$0xff] }
 0x189   : > { %2577 = vmatpush1.bf16.msra.mxu0 %v3791_v61  ;;  %2618 = vmatpush1.bf16.msra.mxu1 %v3919_v62  ;;  %v1145_v61 = vld [vmem:[#allocation9 + $0x748] sm:$0xff] }
 0x18a   : > { %2578 = vmatprep.subr.bf16.mxu0 %v3784_v63  ;;  %2619 = vmatprep.subr.bf16.mxu1 %v3912_v0  ;;  %v1149_v62 = vld [vmem:[#allocation9 + $0x768] sm:$0xff]  ;;  %v3863_v63 = vcombine.low %v1025_v51, %v1029_v52  ;;  %v3991_v0 = vcombine.low %v1153_v53, %v1157_v54  ;;  %v970_v53 = vld [vmem:[#allocation9 + $0x1d0] sm:$0xff] }
 0x18b   : > { %v3984_v2 = vcombine.high %v1145_v61, %v1149_v62  ;;  %v997_v26 = vld [vmem:[#allocation9 + $0x2a8] sm:$0xff]  ;;  %v974_v54 = vld [vmem:[#allocation9 + $0x1f0] sm:$0xff] }
 0x18c   : > { %v3832_v31 = vcombine.high %v993_v25, %v997_v26  ;;  %v985_v33 = vld [vmem:[#allocation9 + $0x248] sm:$0xff] }
 0x18d   : > { %2579 = vmatpush1.bf16.msra.mxu0 %v3783_v5  ;;  %2620 = vmatpush1.bf16.msra.mxu1 %v3911_v6  ;;  %v1137_v5 = vld [vmem:[#allocation9 + $0x708] sm:$0xff] }
 0x18e   : > { %2580 = vmatprep.subr.bf16.mxu0 %v3776_v7  ;;  %2621 = vmatprep.subr.bf16.mxu1 %v3904_v8  ;;  %v1141_v6 = vld [vmem:[#allocation9 + $0x728] sm:$0xff]  ;;  %v3855_v7 = vcombine.low %v1017_v59, %v1021_v60  ;;  %v3983_v8 = vcombine.low %v1145_v61, %v1149_v62  ;;  %v3810_v59 = vcombine.high %v970_v53, %v974_v54  ;;  %v962_v61 = vld [vmem:[#allocation9 + $0x190] sm:$0xff] }
 0x18f   : > { %v3976_v10 = vcombine.high %v1137_v5, %v1141_v6  ;;  %v989_v34 = vld [vmem:[#allocation9 + $0x268] sm:$0xff]  ;;  %v966_v62 = vld [vmem:[#allocation9 + $0x1b0] sm:$0xff] }
 0x190   : > { %v3824_v40 = vcombine.high %v985_v33, %v989_v34  ;;  %v977_v42 = vld [vmem:[#allocation9 + $0x208] sm:$0xff] }
 0x191   : > { %2581 = vmatpush1.bf16.msra.mxu0 %v3775_v19  ;;  %2622 = vmatpush1.bf16.msra.mxu1 %v3903_v20  ;;  %v1129_v19 = vld [vmem:[#allocation9 + $0x6c8] sm:$0xff] }
 0x192   : > { %2582 = vmatprep.subr.bf16.mxu0 %v3768_v21  ;;  %2623 = vmatprep.subr.bf16.mxu1 %v3896_v22  ;;  %v1133_v20 = vld [vmem:[#allocation9 + $0x6e8] sm:$0xff]  ;;  %v3847_v21 = vcombine.low %v1009_v3, %v1013_v4  ;;  %v3975_v22 = vcombine.low %v1137_v5, %v1141_v6  ;;  %v3802_v3 = vcombine.high %v962_v61, %v966_v62  ;;  %v954_v5 = vld [vmem:[#allocation9 + $0x150] sm:$0xff] }
 0x193   : > { %v3968_v24 = vcombine.high %v1129_v19, %v1133_v20  ;;  %v981_v43 = vld [vmem:[#allocation9 + $0x228] sm:$0xff]  ;;  %v958_v6 = vld [vmem:[#allocation9 + $0x170] sm:$0xff] }
 0x194   : > { %v3816_v51 = vcombine.high %v977_v42, %v981_v43 }
 0x195   : > { %2583 = vmatpush1.bf16.msra.mxu0 %v3767_v27  ;;  %2624 = vmatpush1.bf16.msra.mxu1 %v3895_v28  ;;  %v1121_v27 = vld [vmem:[#allocation9 + $0x688] sm:$0xff] }
 0x196   : > { %2584 = vmatprep.subr.bf16.mxu0 %v3760_v29  ;;  %2625 = vmatprep.subr.bf16.mxu1 %v3888_v30  ;;  %v1125_v28 = vld [vmem:[#allocation9 + $0x6a8] sm:$0xff]  ;;  %v3839_v29 = vcombine.low %v1001_v11, %v1005_v16  ;;  %v3967_v30 = vcombine.low %v1129_v19, %v1133_v20  ;;  %v3794_v11 = vcombine.high %v954_v5, %v958_v6  ;;  %v946_v19 = vld [vmem:[#allocation9 + $0x110] sm:$0xff] }
 0x197   : > { %v3960_v32 = vcombine.high %v1121_v27, %v1125_v28  ;;  %v950_v20 = vld [vmem:[#allocation9 + $0x130] sm:$0xff] }
 0x199   : > { %2585 = vmatpush1.bf16.msra.mxu0 %v3759_v35  ;;  %2626 = vmatpush1.bf16.msra.mxu1 %v3887_v36  ;;  %v1113_v35 = vld [vmem:[#allocation9 + $0x648] sm:$0xff] }
 0x19a   : > { %2586 = vmatprep.subr.bf16.mxu0 %v3752_v37  ;;  %2627 = vmatprep.subr.bf16.mxu1 %v3880_v39  ;;  %v1117_v36 = vld [vmem:[#allocation9 + $0x668] sm:$0xff]  ;;  %v3831_v37 = vcombine.low %v993_v25, %v997_v26  ;;  %v3959_v39 = vcombine.low %v1121_v27, %v1125_v28  ;;  %v3786_v25 = vcombine.high %v946_v19, %v950_v20  ;;  %v938_v27 = vld [vmem:[#allocation9 + $0xd0] sm:$0xff] }
 0x19b   : > { %v3952_v41 = vcombine.high %v1113_v35, %v1117_v36  ;;  %v942_v28 = vld [vmem:[#allocation9 + $0xf0] sm:$0xff] }
 0x19d   : > { %2587 = vmatpush1.bf16.msra.mxu0 %v3751_v47  ;;  %2628 = vmatpush1.bf16.msra.mxu1 %v3879_v48  ;;  %v1105_v47 = vld [vmem:[#allocation9 + $0x608] sm:$0xff] }
 0x19e   : > { %2588 = vmatprep.subr.bf16.mxu0 %v3872_v49  ;;  %2629 = vmatprep.subr.bf16.mxu1 %v4000_v50  ;;  %v1109_v48 = vld [vmem:[#allocation9 + $0x628] sm:$0xff]  ;;  %v3823_v49 = vcombine.low %v985_v33, %v989_v34  ;;  %v3951_v50 = vcombine.low %v1113_v35, %v1117_v36  ;;  %v3778_v33 = vcombine.high %v938_v27, %v942_v28  ;;  %v930_v35 = vld [vmem:[#allocation9 + $0x90] sm:$0xff] }
 0x19f   : > { %v3944_v52 = vcombine.high %v1105_v47, %v1109_v48  ;;  %v934_v36 = vld [vmem:[#allocation9 + $0xb0] sm:$0xff] }
 0x1a1   : > { %2589 = vmatpush2.bf16.msra.mxu0 %v3871_v55  ;;  %2630 = vmatpush2.bf16.msra.mxu1 %v3999_v56  ;;  %v1098_v55 = vld [vmem:[#allocation9 + $0x5d0] sm:$0xff] }
 0x1a2   : > { %2590 = vmatprep.subr.bf16.mxu0 %v3864_v57  ;;  %2631 = vmatprep.subr.bf16.mxu1 %v3992_v58  ;;  %v1102_v56 = vld [vmem:[#allocation9 + $0x5f0] sm:$0xff]  ;;  %v3815_v57 = vcombine.low %v977_v42, %v981_v43  ;;  %v3943_v58 = vcombine.low %v1105_v47, %v1109_v48  ;;  %v3770_v42 = vcombine.high %v930_v35, %v934_v36 }
 0x1a3   : > { %v3938_v60 = vcombine.high %v1098_v55, %v1102_v56  ;;  %v922_v47 = vld [vmem:[#allocation9 + $0x50] sm:$0xff] }
 0x1a4   : > { %v926_v48 = vld [vmem:[#allocation9 + $0x70] sm:$0xff] }
 0x1a5   : > { %2591 = vmatpush2.bf16.msra.mxu0 %v3863_v63  ;;  %2632 = vmatpush2.bf16.msra.mxu1 %v3991_v0  ;;  %v1090_v63 = vld [vmem:[#allocation9 + $0x590] sm:$0xff] }
 0x1a6   : > { %2592 = vmatprep.subr.bf16.mxu0 %v3856_v1  ;;  %2633 = vmatprep.subr.bf16.mxu1 %v3984_v2  ;;  %v1094_v0 = vld [vmem:[#allocation9 + $0x5b0] sm:$0xff]  ;;  %v3809_v1 = vcombine.low %v970_v53, %v974_v54  ;;  %v3937_v2 = vcombine.low %v1098_v55, %v1102_v56  ;;  %v3762_v53 = vcombine.high %v922_v47, %v926_v48 }
 0x1a7   : > { %v3930_v4 = vcombine.high %v1090_v63, %v1094_v0  ;;  %v914_v55 = vld [vmem:[#allocation9 + $0x10] sm:$0xff] }
 0x1a8   : > { %v918_v56 = vld [vmem:[#allocation9 + $0x30] sm:$0xff] }
 0x1a9   : > { %2593 = vmatpush2.bf16.msra.mxu0 %v3855_v7  ;;  %2634 = vmatpush2.bf16.msra.mxu1 %v3983_v8  ;;  %v1082_v7 = vld [vmem:[#allocation9 + $0x550] sm:$0xff] }
 0x1aa   : > { %2594 = vmatprep.subr.bf16.mxu0 %v3848_v9  ;;  %2635 = vmatprep.subr.bf16.mxu1 %v3976_v10  ;;  %v1086_v8 = vld [vmem:[#allocation9 + $0x570] sm:$0xff]  ;;  %v3801_v9 = vcombine.low %v962_v61, %v966_v62  ;;  %v3929_v10 = vcombine.low %v1090_v63, %v1094_v0  ;;  %v3754_v61 = vcombine.high %v914_v55, %v918_v56 }
 0x1ab   : > { %v3922_v16 = vcombine.high %v1082_v7, %v1086_v8  ;;  %v1034_v63 = vld [vmem:[#allocation9 + $0x3d0] sm:$0xff] }
 0x1ac   : > { %v1038_v0 = vld [vmem:[#allocation9 + $0x3f0] sm:$0xff] }
 0x1ad   : > { %2595 = vmatpush2.bf16.msra.mxu0 %v3847_v21  ;;  %2636 = vmatpush2.bf16.msra.mxu1 %v3975_v22  ;;  %v1074_v21 = vld [vmem:[#allocation9 + $0x510] sm:$0xff] }
 0x1ae   : > { %2596 = vmatprep.subr.bf16.mxu0 %v3840_v23  ;;  %2637 = vmatprep.subr.bf16.mxu1 %v3968_v24  ;;  %v1078_v22 = vld [vmem:[#allocation9 + $0x530] sm:$0xff]  ;;  %v3793_v23 = vcombine.low %v954_v5, %v958_v6  ;;  %v3921_v24 = vcombine.low %v1082_v7, %v1086_v8  ;;  %v3874_v5 = vcombine.high %v1034_v63, %v1038_v0 }
 0x1af   : > { %v3914_v26 = vcombine.high %v1074_v21, %v1078_v22  ;;  %v1026_v7 = vld [vmem:[#allocation9 + $0x390] sm:$0xff] }
 0x1b0   : > { %v1030_v8 = vld [vmem:[#allocation9 + $0x3b0] sm:$0xff] }
 0x1b1   : > { %2597 = vmatpush2.bf16.msra.mxu0 %v3839_v29  ;;  %2638 = vmatpush2.bf16.msra.mxu1 %v3967_v30  ;;  %v1066_v29 = vld [vmem:[#allocation9 + $0x4d0] sm:$0xff] }
 0x1b2   : > { %2598 = vmatprep.subr.bf16.mxu0 %v3832_v31  ;;  %2639 = vmatprep.subr.bf16.mxu1 %v3960_v32  ;;  %v1070_v30 = vld [vmem:[#allocation9 + $0x4f0] sm:$0xff]  ;;  %v3785_v31 = vcombine.low %v946_v19, %v950_v20  ;;  %v3913_v32 = vcombine.low %v1074_v21, %v1078_v22  ;;  %v3866_v19 = vcombine.high %v1026_v7, %v1030_v8 }
 0x1b3   : > { %v3906_v34 = vcombine.high %v1066_v29, %v1070_v30  ;;  %v1018_v21 = vld [vmem:[#allocation9 + $0x350] sm:$0xff] }
 0x1b4   : > { %v1022_v22 = vld [vmem:[#allocation9 + $0x370] sm:$0xff] }
 0x1b5   : > { %2599 = vmatpush2.bf16.msra.mxu0 %v3831_v37  ;;  %2640 = vmatpush2.bf16.msra.mxu1 %v3959_v39  ;;  %v1058_v37 = vld [vmem:[#allocation9 + $0x490] sm:$0xff] }
 0x1b6   : > { %2600 = vmatprep.subr.bf16.mxu0 %v3824_v40  ;;  %2641 = vmatprep.subr.bf16.mxu1 %v3952_v41  ;;  %v1062_v39 = vld [vmem:[#allocation9 + $0x4b0] sm:$0xff]  ;;  %v3777_v40 = vcombine.low %v938_v27, %v942_v28  ;;  %v3905_v41 = vcombine.low %v1066_v29, %v1070_v30  ;;  %v3858_v27 = vcombine.high %v1018_v21, %v1022_v22 }
 0x1b7   : > { %v3898_v43 = vcombine.high %v1058_v37, %v1062_v39  ;;  %v1010_v29 = vld [vmem:[#allocation9 + $0x310] sm:$0xff] }
 0x1b8   : > { %v1014_v30 = vld [vmem:[#allocation9 + $0x330] sm:$0xff] }
 0x1b9   : > { %2601 = vmatpush2.bf16.msra.mxu0 %v3823_v49  ;;  %2642 = vmatpush2.bf16.msra.mxu1 %v3951_v50  ;;  %v1050_v49 = vld [vmem:[#allocation9 + $0x450] sm:$0xff] }
 0x1ba   : > { %2602 = vmatprep.subr.bf16.mxu0 %v3816_v51  ;;  %2643 = vmatprep.subr.bf16.mxu1 %v3944_v52  ;;  %v1054_v50 = vld [vmem:[#allocation9 + $0x470] sm:$0xff]  ;;  %v3769_v51 = vcombine.low %v930_v35, %v934_v36  ;;  %v3897_v52 = vcombine.low %v1058_v37, %v1062_v39  ;;  %v3850_v35 = vcombine.high %v1010_v29, %v1014_v30 }
 0x1bb   : > { %v3890_v54 = vcombine.high %v1050_v49, %v1054_v50  ;;  %v1002_v37 = vld [vmem:[#allocation9 + $0x2d0] sm:$0xff] }
 0x1bc   : > { %v1006_v39 = vld [vmem:[#allocation9 + $0x2f0] sm:$0xff] }
 0x1bd   : > { %2603 = vmatpush2.bf16.msra.mxu0 %v3815_v57  ;;  %2644 = vmatpush2.bf16.msra.mxu1 %v3943_v58  ;;  %v1042_v57 = vld [vmem:[#allocation9 + $0x410] sm:$0xff] }
 0x1be   : > { %2654 = vmatprep.subr.bf16.mxu0 %v3810_v59  ;;  %2695 = vmatprep.subr.bf16.mxu1 %v3938_v60  ;;  %v1046_v58 = vld [vmem:[#allocation9 + $0x430] sm:$0xff]  ;;  %v3761_v59 = vcombine.low %v922_v47, %v926_v48  ;;  %v3889_v60 = vcombine.low %v1050_v49, %v1054_v50  ;;  %v3842_v47 = vcombine.high %v1002_v37, %v1006_v39 }
 0x1bf   : > { %v3882_v62 = vcombine.high %v1042_v57, %v1046_v58  ;;  %v994_v49 = vld [vmem:[#allocation9 + $0x290] sm:$0xff] }
 0x1c0   : > { %2605 = vmatmul.mubr.bf16.vlgmr.msra.gmra.mxu0 %v4884_v46  ;;  %2646 = vmatmul.mubr.bf16.vlgmr.msra.gmra.mxu1 %v4878_v38  ;;  %v998_v50 = vld [vmem:[#allocation9 + $0x2b0] sm:$0xff] }
 0x1c1   : > { %2655 = vmatpush1.bf16.msra.mxu0 %v3809_v1  ;;  %2686 = vmatprep.mubr.bf16.mxu0 %v4880_v44  ;;  %v1162_v1 = vld [vmem:[#allocation9 + $0x7d0] sm:$0xff] }
 0x1c2   : > { %2696 = vmatpush1.bf16.msra.mxu1 %v3937_v2  ;;  %2727 = vmatprep.mubr.bf16.mxu1 %v4882_v45  ;;  %v1166_v2 = vld [vmem:[#allocation9 + $0x7f0] sm:$0xff] }
 0x1c3   : > { %2656 = vmatprep.subr.bf16.mxu0 %v3802_v3  ;;  %2697 = vmatprep.subr.bf16.mxu1 %v3930_v4  ;;  %v3753_v3 = vcombine.low %v914_v55, %v918_v56  ;;  %v3881_v4 = vcombine.low %v1042_v57, %v1046_v58  ;;  %v4002_v6 = vcombine.high %v1162_v1, %v1166_v2  ;;  %v986_v57 = vld [vmem:[#allocation9 + $0x250] sm:$0xff] }
 0x1c4   : > { %v3834_v55 = vcombine.high %v994_v49, %v998_v50  ;;  %v990_v58 = vld [vmem:[#allocation9 + $0x270] sm:$0xff] }
 0x1c5   : > { %2657 = vmatpush1.bf16.msra.mxu0 %v3801_v9  ;;  %v1154_v9 = vld [vmem:[#allocation9 + $0x790] sm:$0xff] }
 0x1c6   : > { %2698 = vmatpush1.bf16.msra.mxu1 %v3929_v10  ;;  %2658 = vmatprep.subr.bf16.mxu0 %v3794_v11  ;;  %v1158_v10 = vld [vmem:[#allocation9 + $0x7b0] sm:$0xff]  ;;  %v3873_v11 = vcombine.low %v1034_v63, %v1038_v0  ;;  %v3826_v63 = vcombine.high %v986_v57, %v990_v58 }
 0x1c7   : > { %2699 = vmatprep.subr.bf16.mxu1 %v3922_v16  ;;  %v4001_v16 = vcombine.low %v1162_v1, %v1166_v2  ;;  %v3994_v20 = vcombine.high %v1154_v9, %v1158_v10  ;;  %v978_v1 = vld [vmem:[#allocation9 + $0x210] sm:$0xff] }
 0x1c8   : > { %v982_v2 = vld [vmem:[#allocation9 + $0x230] sm:$0xff] }
 0x1c9   : > { %2659 = vmatpush1.bf16.msra.mxu0 %v3793_v23  ;;  %v1146_v23 = vld [vmem:[#allocation9 + $0x750] sm:$0xff] }
 0x1ca   : > { %2700 = vmatpush1.bf16.msra.mxu1 %v3921_v24  ;;  %2660 = vmatprep.subr.bf16.mxu0 %v3786_v25  ;;  %v1150_v24 = vld [vmem:[#allocation9 + $0x770] sm:$0xff]  ;;  %v3865_v25 = vcombine.low %v1026_v7, %v1030_v8  ;;  %v3818_v7 = vcombine.high %v978_v1, %v982_v2 }
 0x1cb   : > { %2701 = vmatprep.subr.bf16.mxu1 %v3914_v26  ;;  %v3993_v26 = vcombine.low %v1154_v9, %v1158_v10  ;;  %v3986_v28 = vcombine.high %v1146_v23, %v1150_v24  ;;  %v971_v9 = vld [vmem:[#allocation9 + $0x1d8] sm:$0xff] }
 0x1cc   : > { %v975_v10 = vld [vmem:[#allocation9 + $0x1f8] sm:$0xff] }
 0x1cd   : > { %2661 = vmatpush1.bf16.msra.mxu0 %v3785_v31  ;;  %v1138_v31 = vld [vmem:[#allocation9 + $0x710] sm:$0xff] }
 0x1ce   : > { %2702 = vmatpush1.bf16.msra.mxu1 %v3913_v32  ;;  %2662 = vmatprep.subr.bf16.mxu0 %v3778_v33  ;;  %v1142_v32 = vld [vmem:[#allocation9 + $0x730] sm:$0xff]  ;;  %v3857_v33 = vcombine.low %v1018_v21, %v1022_v22  ;;  %v3812_v21 = vcombine.high %v971_v9, %v975_v10 }
 0x1cf   : > { %2703 = vmatprep.subr.bf16.mxu1 %v3906_v34  ;;  %v3985_v34 = vcombine.low %v1146_v23, %v1150_v24  ;;  %v3978_v36 = vcombine.high %v1138_v31, %v1142_v32  ;;  %v963_v23 = vld [vmem:[#allocation9 + $0x198] sm:$0xff] }
 0x1d0   : > { %v967_v24 = vld [vmem:[#allocation9 + $0x1b8] sm:$0xff] }
 0x1d1   : > { %2663 = vmatpush1.bf16.msra.mxu0 %v3777_v40  ;;  %v1130_v40 = vld [vmem:[#allocation9 + $0x6d0] sm:$0xff] }
 0x1d2   : > { %2704 = vmatpush1.bf16.msra.mxu1 %v3905_v41  ;;  %2664 = vmatprep.subr.bf16.mxu0 %v3770_v42  ;;  %v1134_v41 = vld [vmem:[#allocation9 + $0x6f0] sm:$0xff]  ;;  %v3849_v42 = vcombine.low %v1010_v29, %v1014_v30  ;;  %v3804_v29 = vcombine.high %v963_v23, %v967_v24  ;;  %v955_v30 = vld [vmem:[#allocation9 + $0x158] sm:$0xff] }
 0x1d3   : > { %2705 = vmatprep.subr.bf16.mxu1 %v3898_v43  ;;  %v3977_v43 = vcombine.low %v1138_v31, %v1142_v32  ;;  %v3970_v48 = vcombine.high %v1130_v40, %v1134_v41  ;;  %v959_v31 = vld [vmem:[#allocation9 + $0x178] sm:$0xff] }
 0x1d5   : > { %2665 = vmatpush1.bf16.msra.mxu0 %v3769_v51  ;;  %v1122_v51 = vld [vmem:[#allocation9 + $0x690] sm:$0xff] }
 0x1d6   : > { %2706 = vmatpush1.bf16.msra.mxu1 %v3897_v52  ;;  %2666 = vmatprep.subr.bf16.mxu0 %v3762_v53  ;;  %v1126_v52 = vld [vmem:[#allocation9 + $0x6b0] sm:$0xff]  ;;  %v3841_v53 = vcombine.low %v1002_v37, %v1006_v39  ;;  %v3796_v37 = vcombine.high %v955_v30, %v959_v31 }
 0x1d7   : > { %2707 = vmatprep.subr.bf16.mxu1 %v3890_v54  ;;  %v3969_v54 = vcombine.low %v1130_v40, %v1134_v41  ;;  %v3962_v56 = vcombine.high %v1122_v51, %v1126_v52  ;;  %v947_v40 = vld [vmem:[#allocation9 + $0x118] sm:$0xff] }
 0x1d8   : > { %v951_v41 = vld [vmem:[#allocation9 + $0x138] sm:$0xff] }
 0x1d9   : > { %2667 = vmatpush1.bf16.msra.mxu0 %v3761_v59  ;;  %v1114_v59 = vld [vmem:[#allocation9 + $0x650] sm:$0xff] }
 0x1da   : > { %2708 = vmatpush1.bf16.msra.mxu1 %v3889_v60  ;;  %2668 = vmatprep.subr.bf16.mxu0 %v3754_v61  ;;  %v1118_v60 = vld [vmem:[#allocation9 + $0x670] sm:$0xff]  ;;  %v3833_v61 = vcombine.low %v994_v49, %v998_v50  ;;  %v3788_v49 = vcombine.high %v947_v40, %v951_v41  ;;  %v939_v50 = vld [vmem:[#allocation9 + $0xd8] sm:$0xff] }
 0x1db   : > { %2709 = vmatprep.subr.bf16.mxu1 %v3882_v62  ;;  %v3961_v62 = vcombine.low %v1122_v51, %v1126_v52  ;;  %v3954_v0 = vcombine.high %v1114_v59, %v1118_v60  ;;  %v943_v51 = vld [vmem:[#allocation9 + $0xf8] sm:$0xff] }
 0x1dc   : > { %v1067_v52 = vld [vmem:[#allocation9 + $0x4d8] sm:$0xff] }
 0x1dd   : > { %2669 = vmatpush1.bf16.msra.mxu0 %v3753_v3  ;;  %v1106_v3 = vld [vmem:[#allocation9 + $0x610] sm:$0xff] }
 0x1de   : > { %2710 = vmatpush1.bf16.msra.mxu1 %v3881_v4  ;;  %2670 = vmatprep.subr.bf16.mxu0 %v3874_v5  ;;  %v1110_v4 = vld [vmem:[#allocation9 + $0x630] sm:$0xff]  ;;  %v3825_v5 = vcombine.low %v986_v57, %v990_v58  ;;  %v931_v57 = vld [vmem:[#allocation9 + $0x98] sm:$0xff] }
 0x1df   : > { %2711 = vmatprep.subr.bf16.mxu1 %v4002_v6  ;;  %v3953_v6 = vcombine.low %v1114_v59, %v1118_v60  ;;  %v3946_v8 = vcombine.high %v1106_v3, %v1110_v4  ;;  %v935_v58 = vld [vmem:[#allocation9 + $0xb8] sm:$0xff] }
 0x1e0   : > { %v1059_v59 = vld [vmem:[#allocation9 + $0x498] sm:$0xff] }
 0x1e1   : > { %2671 = vmatpush2.bf16.msra.mxu0 %v3873_v11  ;;  %v1099_v11 = vld [vmem:[#allocation9 + $0x5d8] sm:$0xff] }
 0x1e2   : > { %2712 = vmatpush2.bf16.msra.mxu1 %v4001_v16  ;;  %2672 = vmatprep.subr.bf16.mxu0 %v3866_v19  ;;  %v1103_v16 = vld [vmem:[#allocation9 + $0x5f8] sm:$0xff]  ;;  %v3817_v19 = vcombine.low %v978_v1, %v982_v2 }
 0x1e3   : > { %2713 = vmatprep.subr.bf16.mxu1 %v3994_v20  ;;  %v3945_v20 = vcombine.low %v1106_v3, %v1110_v4  ;;  %v3940_v22 = vcombine.high %v1099_v11, %v1103_v16  ;;  %v1063_v60 = vld [vmem:[#allocation9 + $0x4b8] sm:$0xff] }
 0x1e4   : > { %v923_v1 = vld [vmem:[#allocation9 + $0x58] sm:$0xff] }
 0x1e5   : > { %2673 = vmatpush2.bf16.msra.mxu0 %v3865_v25  ;;  %v3811_v25 = vcombine.low %v971_v9, %v975_v10  ;;  %v927_v2 = vld [vmem:[#allocation9 + $0x78] sm:$0xff] }
 0x1e6   : > { %2714 = vmatpush2.bf16.msra.mxu1 %v3993_v26  ;;  %2674 = vmatprep.subr.bf16.mxu0 %v3858_v27  ;;  %v1091_v26 = vld [vmem:[#allocation9 + $0x598] sm:$0xff] }
 0x1e7   : > { %2715 = vmatprep.subr.bf16.mxu1 %v3986_v28  ;;  %v1095_v27 = vld [vmem:[#allocation9 + $0x5b8] sm:$0xff]  ;;  %v3939_v28 = vcombine.low %v1099_v11, %v1103_v16 }
 0x1e8   : > { %v3932_v32 = vcombine.high %v1091_v26, %v1095_v27  ;;  %v1051_v3 = vld [vmem:[#allocation9 + $0x458] sm:$0xff] }
 0x1e9   : > { %2675 = vmatpush2.bf16.msra.mxu0 %v3857_v33  ;;  %v1083_v33 = vld [vmem:[#allocation9 + $0x558] sm:$0xff] }
 0x1ea   : > { %2716 = vmatpush2.bf16.msra.mxu1 %v3985_v34  ;;  %2676 = vmatprep.subr.bf16.mxu0 %v3850_v35  ;;  %v1087_v34 = vld [vmem:[#allocation9 + $0x578] sm:$0xff]  ;;  %v3803_v35 = vcombine.low %v963_v23, %v967_v24 }
 0x1eb   : > { %2717 = vmatprep.subr.bf16.mxu1 %v3978_v36  ;;  %v3931_v36 = vcombine.low %v1091_v26, %v1095_v27  ;;  %v3924_v39 = vcombine.high %v1083_v33, %v1087_v34  ;;  %v1055_v4 = vld [vmem:[#allocation9 + $0x478] sm:$0xff] }
 0x1ec   : > { %v915_v9 = vld [vmem:[#allocation9 + $0x18] sm:$0xff] }
 0x1ed   : > { %2677 = vmatpush2.bf16.msra.mxu0 %v3849_v42  ;;  %v1075_v42 = vld [vmem:[#allocation9 + $0x518] sm:$0xff] }
 0x1ee   : > { %2718 = vmatpush2.bf16.msra.mxu1 %v3977_v43  ;;  %2678 = vmatprep.subr.bf16.mxu0 %v3842_v47  ;;  %v1079_v43 = vld [vmem:[#allocation9 + $0x538] sm:$0xff]  ;;  %v3795_v47 = vcombine.low %v955_v30, %v959_v31 }
 0x1ef   : > { %2719 = vmatprep.subr.bf16.mxu1 %v3970_v48  ;;  %v3923_v48 = vcombine.low %v1083_v33, %v1087_v34  ;;  %v919_v10 = vld [vmem:[#allocation9 + $0x38] sm:$0xff] }
 0x1f0   : > { %v1043_v11 = vld [vmem:[#allocation9 + $0x418] sm:$0xff]  ;;  %v3755_v27 = vcombine.low %v915_v9, %v919_v10 }
 0x1f1   : > { %2679 = vmatpush2.bf16.msra.mxu0 %v3841_v53  ;;  %v1071_v53 = vld [vmem:[#allocation9 + $0x4f8] sm:$0xff] }
 0x1f2   : > { %2720 = vmatpush2.bf16.msra.mxu1 %v3969_v54  ;;  %2680 = vmatprep.subr.bf16.mxu0 %v3834_v55  ;;  %v3915_v54 = vcombine.low %v1075_v42, %v1079_v43  ;;  %v3780_v55 = vcombine.high %v939_v50, %v943_v51  ;;  %v1047_v16 = vld [vmem:[#allocation9 + $0x438] sm:$0xff] }
 0x1f3   : > { %2721 = vmatprep.subr.bf16.mxu1 %v3962_v56  ;;  %v3908_v56 = vcombine.high %v1067_v52, %v1071_v53  ;;  %v1035_v23 = vld [vmem:[#allocation9 + $0x3d8] sm:$0xff] }
 0x1f4   : > { %v1039_v24 = vld [vmem:[#allocation9 + $0x3f8] sm:$0xff] }
 0x1f5   : > { %2681 = vmatpush2.bf16.msra.mxu0 %v3833_v61  ;;  %v3779_v61 = vcombine.low %v939_v50, %v943_v51  ;;  %v1167_v26 = vld [vmem:[#allocation9 + $0x7f8] sm:$0xff] }
 0x1f6   : > { %2722 = vmatpush2.bf16.msra.mxu1 %v3961_v62  ;;  %2682 = vmatprep.subr.bf16.mxu0 %v3826_v63  ;;  %v3907_v62 = vcombine.low %v1067_v52, %v1071_v53  ;;  %v3772_v63 = vcombine.high %v931_v57, %v935_v58  ;;  %v1027_v31 = vld [vmem:[#allocation9 + $0x398] sm:$0xff] }
 0x1f7   : > { %2723 = vmatprep.subr.bf16.mxu1 %v3954_v0  ;;  %v3900_v0 = vcombine.high %v1059_v59, %v1063_v60  ;;  %v1155_v33 = vld [vmem:[#allocation9 + $0x798] sm:$0xff] }
 0x1f8   : > { %v1159_v34 = vld [vmem:[#allocation9 + $0x7b8] sm:$0xff] }
 0x1f9   : > { %2683 = vmatpush2.bf16.msra.mxu0 %v3825_v5  ;;  %v3771_v5 = vcombine.low %v931_v57, %v935_v58  ;;  %v1011_v50 = vld [vmem:[#allocation9 + $0x318] sm:$0xff] }
 0x1fa   : > { %2724 = vmatpush2.bf16.msra.mxu1 %v3953_v6  ;;  %2684 = vmatprep.subr.bf16.mxu0 %v3818_v7  ;;  %v3899_v6 = vcombine.low %v1059_v59, %v1063_v60  ;;  %v3764_v7 = vcombine.high %v923_v1, %v927_v2  ;;  %v1015_v51 = vld [vmem:[#allocation9 + $0x338] sm:$0xff] }
 0x1fb   : > { %2725 = vmatprep.subr.bf16.mxu1 %v3946_v8  ;;  %v3892_v8 = vcombine.high %v1051_v3, %v1055_v4  ;;  %v1139_v52 = vld [vmem:[#allocation9 + $0x718] sm:$0xff] }
 0x1fc   : > { %v1143_v53 = vld [vmem:[#allocation9 + $0x738] sm:$0xff] }
 0x1fd   : > { %2685 = vmatpush2.bf16.msra.mxu0 %v3817_v19  ;;  %v3763_v19 = vcombine.low %v923_v1, %v927_v2  ;;  %v1003_v57 = vld [vmem:[#allocation9 + $0x2d8] sm:$0xff] }
 0x1fe   : > { %2726 = vmatpush2.bf16.msra.mxu1 %v3945_v20  ;;  %2736 = vmatprep.subr.bf16.mxu0 %v3812_v21  ;;  %v3891_v20 = vcombine.low %v1051_v3, %v1055_v4  ;;  %v3756_v21 = vcombine.high %v915_v9, %v919_v10  ;;  %v1007_v58 = vld [vmem:[#allocation9 + $0x2f8] sm:$0xff] }
 0x1ff   : > { %2777 = vmatprep.subr.bf16.mxu1 %v3940_v22  ;;  %v3884_v22 = vcombine.high %v1043_v11, %v1047_v16  ;;  %v1131_v59 = vld [vmem:[#allocation9 + $0x6d8] sm:$0xff] }
 0x200   : > { %2687 = vmatmul.mubr.bf16.vlgmr.msra.gmra.mxu0 %v4884_v46  ;;  %v1135_v60 = vld [vmem:[#allocation9 + $0x6f8] sm:$0xff] }
 0x201   : > { %2728 = vmatmul.mubr.bf16.vlgmr.msra.gmra.mxu1 %v4878_v38  ;;  %2737 = vmatpush1.bf16.msra.mxu0 %v3811_v25  ;;  %v1163_v25 = vld [vmem:[#allocation9 + $0x7d8] sm:$0xff] }
 0x202   : > { %2768 = vmatprep.mubr.bf16.mxu0 %v4880_v44  ;;  %2778 = vmatpush1.bf16.msra.mxu1 %v3939_v28  ;;  %v3916_v44 = vcombine.high %v1075_v42, %v1079_v43  ;;  %v3883_v28 = vcombine.low %v1043_v11, %v1047_v16  ;;  %v4004_v30 = vcombine.high %v1163_v25, %v1167_v26  ;;  %v1147_v42 = vld [vmem:[#allocation9 + $0x758] sm:$0xff] }
 0x203   : > { %2809 = vmatprep.mubr.bf16.mxu1 %v4882_v45  ;;  %2738 = vmatprep.subr.bf16.mxu0 %v3804_v29  ;;  %v3787_v45 = vcombine.low %v947_v40, %v951_v41  ;;  %v3876_v29 = vcombine.high %v1035_v23, %v1039_v24  ;;  %v1019_v40 = vld [vmem:[#allocation9 + $0x358] sm:$0xff] }
 0x204   : > { %2779 = vmatprep.subr.bf16.mxu1 %v3932_v32  ;;  %v1031_v32 = vld [vmem:[#allocation9 + $0x3b8] sm:$0xff] }
 0x205   : > { %2739 = vmatpush1.bf16.msra.mxu0 %v3803_v35  ;;  %v3875_v35 = vcombine.low %v1035_v23, %v1039_v24  ;;  %v1023_v41 = vld [vmem:[#allocation9 + $0x378] sm:$0xff] }
 0x206   : > { %2780 = vmatpush1.bf16.msra.mxu1 %v3931_v36  ;;  %2740 = vmatprep.subr.bf16.mxu0 %v3796_v37  ;;  %v4003_v36 = vcombine.low %v1163_v25, %v1167_v26  ;;  %v3868_v37 = vcombine.high %v1027_v31, %v1031_v32  ;;  %v1151_v43 = vld [vmem:[#allocation9 + $0x778] sm:$0xff] }
 0x207   : > { %2781 = vmatprep.subr.bf16.mxu1 %v3924_v39  ;;  %v3996_v39 = vcombine.high %v1155_v33, %v1159_v34  ;;  %v995_v1 = vld [vmem:[#allocation9 + $0x298] sm:$0xff] }
 0x208   : > { %v999_v2 = vld [vmem:[#allocation9 + $0x2b8] sm:$0xff] }
 0x209   : > { %2741 = vmatpush1.bf16.msra.mxu0 %v3795_v47  ;;  %v3867_v47 = vcombine.low %v1027_v31, %v1031_v32  ;;  %v1123_v3 = vld [vmem:[#allocation9 + $0x698] sm:$0xff] }
 0x20a   : > { %2782 = vmatpush1.bf16.msra.mxu1 %v3923_v48  ;;  %2742 = vmatprep.subr.bf16.mxu0 %v3788_v49  ;;  %v3995_v48 = vcombine.low %v1155_v33, %v1159_v34  ;;  %v3860_v49 = vcombine.high %v1019_v40, %v1023_v41  ;;  %v1127_v4 = vld [vmem:[#allocation9 + $0x6b8] sm:$0xff] }
 0x20b   : > { %2783 = vmatprep.subr.bf16.mxu1 %v3916_v44  ;;  %v3988_v44 = vcombine.high %v1147_v42, %v1151_v43  ;;  %v987_v9 = vld [vmem:[#allocation9 + $0x258] sm:$0xff] }
 0x20c   : > { %v991_v10 = vld [vmem:[#allocation9 + $0x278] sm:$0xff] }
 0x20d   : > { %2743 = vmatpush1.bf16.msra.mxu0 %v3787_v45  ;;  %v3859_v45 = vcombine.low %v1019_v40, %v1023_v41  ;;  %v1115_v11 = vld [vmem:[#allocation9 + $0x658] sm:$0xff]  ;;  %v4376_v41 = vld [vmem:[#allocation11 + $0xf0] sm:$0xff]  }
 0x20e   : > { %2784 = vmatpush1.bf16.msra.mxu1 %v3915_v54  ;;  %2744 = vmatprep.subr.bf16.mxu0 %v3780_v55  ;;  %v3987_v54 = vcombine.low %v1147_v42, %v1151_v43  ;;  %v3852_v55 = vcombine.high %v1011_v50, %v1015_v51  ;;  %v1119_v16 = vld [vmem:[#allocation9 + $0x678] sm:$0xff] }
 0x20f   : > { %2785 = vmatprep.subr.bf16.mxu1 %v3908_v56  ;;  %v3980_v56 = vcombine.high %v1139_v52, %v1143_v53  ;;  %v979_v23 = vld [vmem:[#allocation9 + $0x218] sm:$0xff] }
 0x210   : > { %v983_v24 = vld [vmem:[#allocation9 + $0x238] sm:$0xff] }
 0x211   : > { %2745 = vmatpush1.bf16.msra.mxu0 %v3779_v61  ;;  %v3851_v61 = vcombine.low %v1011_v50, %v1015_v51  ;;  %v1107_v25 = vld [vmem:[#allocation9 + $0x618] sm:$0xff]  ;;  %v3819_v31 = vcombine.low %v979_v23, %v983_v24  ;;  %v4377_v50 = vld [vmem:[#allocation11 + $0xb0] sm:$0xff]  }
 0x212   : > { %2786 = vmatpush1.bf16.msra.mxu1 %v3907_v62  ;;  %2746 = vmatprep.subr.bf16.mxu0 %v3772_v63  ;;  %v3979_v62 = vcombine.low %v1139_v52, %v1143_v53  ;;  %v3844_v63 = vcombine.high %v1003_v57, %v1007_v58  ;;  %v1111_v26 = vld [vmem:[#allocation9 + $0x638] sm:$0xff]  ;;  %v4378_v52 = vld [vmem:[#allocation11 + $0xe8] sm:$0xff]  }
 0x213   : > { %2787 = vmatprep.subr.bf16.mxu1 %v3900_v0  ;;  %v3972_v0 = vcombine.high %v1131_v59, %v1135_v60  ;;  %v3947_v32 = vcombine.low %v1107_v25, %v1111_v26  ;;  %v4358_v33 = vld [vmem:[#allocation11 + $0x78] sm:$0xff]  }
 0x214   : > { %v4374_v34 = vld [vmem:[#allocation11 + $0xf8] sm:$0xff]  }
 0x215   : > { %2747 = vmatpush1.bf16.msra.mxu0 %v3771_v5  ;;  %v3843_v5 = vcombine.low %v1003_v57, %v1007_v58  ;;  %v4380_v58 = vld [vmem:[#allocation11 + $0xe0] sm:$0xff]  }
 0x216   : > { %2788 = vmatpush1.bf16.msra.mxu1 %v3899_v6  ;;  %2748 = vmatprep.subr.bf16.mxu0 %v3764_v7  ;;  %v3971_v6 = vcombine.low %v1131_v59, %v1135_v60  ;;  %v3836_v7 = vcombine.high %v995_v1, %v999_v2  ;;  %v4365_v60 = vld [vmem:[#allocation11 + $0x20] sm:$0xff]  }
 0x217   : > { %2789 = vmatprep.subr.bf16.mxu1 %v3892_v8  ;;  %v3964_v8 = vcombine.high %v1123_v3, %v1127_v4 }
 0x219   : > { %2749 = vmatpush1.bf16.msra.mxu0 %v3763_v19  ;;  %v3835_v19 = vcombine.low %v995_v1, %v999_v2  ;;  %v4368_v2 = vld [vmem:[#allocation11 + $0x50] sm:$0xff]  }
 0x21a   : > { %2790 = vmatpush1.bf16.msra.mxu1 %v3891_v20  ;;  %2750 = vmatprep.subr.bf16.mxu0 %v3756_v21  ;;  %v3963_v20 = vcombine.low %v1123_v3, %v1127_v4  ;;  %v3828_v21 = vcombine.high %v987_v9, %v991_v10  ;;  %v4383_v3 = vld [vmem:[#allocation11 + $0x98] sm:$0xff]   ;;  %v4384_v4 = vld [vmem:[#allocation11 + $0xd0] sm:$0xff]  }
 0x21b   : > { %2791 = vmatprep.subr.bf16.mxu1 %v3884_v22  ;;  %v3956_v22 = vcombine.high %v1115_v11, %v1119_v16 }
 0x21d   : > { %2751 = vmatpush1.bf16.msra.mxu0 %v3755_v27  ;;  %v3827_v27 = vcombine.low %v987_v9, %v991_v10  ;;  %v4386_v9 = vld [vmem:[#allocation11 + $0xc8] sm:$0xff]  }
 0x21e   : > { %2792 = vmatpush1.bf16.msra.mxu1 %v3883_v28  ;;  %2752 = vmatprep.subr.bf16.mxu0 %v3876_v29  ;;  %v3955_v28 = vcombine.low %v1115_v11, %v1119_v16  ;;  %v3820_v29 = vcombine.high %v979_v23, %v983_v24  ;;  %v4371_v10 = vld [vmem:[#allocation11 + $0x8] sm:$0xff]   ;;  %v4390_v23 = vld [vmem:[#allocation11 + $0x178] sm:$0xff]  }
 0x21f   : > { %2793 = vmatprep.subr.bf16.mxu1 %v4004_v30  ;;  %v3948_v30 = vcombine.high %v1107_v25, %v1111_v26  ;;  %v4387_v16 = vld [vmem:[#allocation11 + $0x88] sm:$0xff]   ;;  %v4406_v24 = vld [vmem:[#allocation11 + $0x1f8] sm:$0xff]  }
 0x220   : > { %v4391_v25 = vld [vmem:[#allocation11 + $0x138] sm:$0xff]  }
 0x221   : > { %2753 = vmatpush2.bf16.msra.mxu0 %v3875_v35  ;;  %v4359_v35 = vld [vmem:[#allocation11 + $0x38] sm:$0xff]  }
 0x222   : > { %2794 = vmatpush2.bf16.msra.mxu1 %v4003_v36  ;;  %2754 = vmatprep.subr.bf16.mxu0 %v3868_v37  ;;  %v4903_v36 = vld [vmem:[%s4981_s4] sm:$0xff] }
 0x223   : > { %2795 = vmatprep.subr.bf16.mxu1 %v3996_v39  ;;  %v4360_v37 = vld [vmem:[#allocation11 + $0x70] sm:$0xff]   ;;  %v4375_v39 = vld [vmem:[#allocation11 + $0xb8] sm:$0xff]   ;;  %v1177_v40 = vrot.slane %v4903_v36, %v481_v17  ;;  %v1173_v1 = vrot.slane %v4903_v36, %v477_v14  ;;  %v4372_v14 = vld [vmem:[#allocation11 + $0x40] sm:$0xff]  }
 0x225   : > { %2755 = vmatpush2.bf16.msra.mxu0 %v3867_v47  ;;  %v4361_v47 = vld [vmem:[#allocation11 + $0x30] sm:$0xff]  }
 0x226   : > { %2796 = vmatpush2.bf16.msra.mxu1 %v3995_v48  ;;  %2756 = vmatprep.subr.bf16.mxu0 %v3860_v49 }
 0x227   : > { %2797 = vmatprep.subr.bf16.mxu1 %v3988_v44  ;;  %v4362_v44 = vld [vmem:[#allocation11 + $0x68] sm:$0xff]  }
 0x229   : > { %2757 = vmatpush2.bf16.msra.mxu0 %v3859_v45 }
 0x22a   : > { %2798 = vmatpush2.bf16.msra.mxu1 %v3987_v54  ;;  %2758 = vmatprep.subr.bf16.mxu0 %v3852_v55 }
 0x22b   : > { %2799 = vmatprep.subr.bf16.mxu1 %v3980_v56  ;;  %v4379_v56 = vld [vmem:[#allocation11 + $0xa8] sm:$0xff]  }
 0x22d   : > { %2759 = vmatpush2.bf16.msra.mxu0 %v3851_v61  ;;  %v4366_v61 = vld [vmem:[#allocation11 + $0x58] sm:$0xff]  }
 0x22e   : > { %2800 = vmatpush2.bf16.msra.mxu1 %v3979_v62  ;;  %2760 = vmatprep.subr.bf16.mxu0 %v3844_v63  ;;  %v4381_v62 = vld [vmem:[#allocation11 + $0xa0] sm:$0xff]   ;;  %v4382_v63 = vld [vmem:[#allocation11 + $0xd8] sm:$0xff]  }
 0x22f   : > { %2801 = vmatprep.subr.bf16.mxu1 %v3972_v0  ;;  %v4367_v0 = vld [vmem:[#allocation11 + $0x18] sm:$0xff]  }
 0x231   : > { %2761 = vmatpush2.bf16.msra.mxu0 %v3843_v5  ;;  %v4369_v5 = vld [vmem:[#allocation11 + $0x10] sm:$0xff]  }
 0x232   : > { %2802 = vmatpush2.bf16.msra.mxu1 %v3971_v6  ;;  %2762 = vmatprep.subr.bf16.mxu0 %v3836_v7  ;;  %v4370_v7 = vld [vmem:[#allocation11 + $0x48] sm:$0xff]  }
 0x233   : > { %2803 = vmatprep.subr.bf16.mxu1 %v3964_v8  ;;  %v4385_v8 = vld [vmem:[#allocation11 + $0x90] sm:$0xff]  }
 0x235   : > { %2763 = vmatpush2.bf16.msra.mxu0 %v3835_v19  ;;  %v4388_v19 = vld [vmem:[#allocation11 + $0xc0] sm:$0xff]  }
 0x236   : > { %2804 = vmatpush2.bf16.msra.mxu1 %v3963_v20  ;;  %2764 = vmatprep.subr.bf16.mxu0 %v3828_v21  ;;  %v4373_v20 = vld [vmem:[#allocation11] sm:$0xff]  }
 0x237   : > { %2805 = vmatprep.subr.bf16.mxu1 %v3956_v22  ;;  %v4389_v22 = vld [vmem:[#allocation11 + $0x80] sm:$0xff]  }
 0x239   : > { %2765 = vmatpush2.bf16.msra.mxu0 %v3827_v27  ;;  %v4392_v27 = vld [vmem:[#allocation11 + $0x170] sm:$0xff]  }
 0x23a   : > { %2806 = vmatpush2.bf16.msra.mxu1 %v3955_v28  ;;  %2766 = vmatprep.subr.bf16.mxu0 %v3820_v29  ;;  %v4393_v28 = vld [vmem:[#allocation11 + $0x130] sm:$0xff]   ;;  %v4394_v29 = vld [vmem:[#allocation11 + $0x168] sm:$0xff]  }
 0x23b   : > { %2807 = vmatprep.subr.bf16.mxu1 %v3948_v30  ;;  %v4395_v30 = vld [vmem:[#allocation11 + $0x128] sm:$0xff]  }
 0x23d   : > { %2767 = vmatpush2.bf16.msra.mxu0 %v3819_v31  ;;  %v4396_v31 = vld [vmem:[#allocation11 + $0x160] sm:$0xff]  }
 0x23e   : > { %2808 = vmatpush2.bf16.msra.mxu1 %v3947_v32  ;;  %4077 = vmatprep.subr.bf16.mxu0 %v4358_v33  ;;  %v4397_v32 = vld [vmem:[#allocation11 + $0x120] sm:$0xff]   ;;  %v4398_v33 = vld [vmem:[#allocation11 + $0x158] sm:$0xff]  }
 0x23f   : > { %4099 = vmatprep.subr.bf16.mxu1 %v4374_v34  ;;  %v4399_v34 = vld [vmem:[#allocation11 + $0x118] sm:$0xff]  }
 0x240   : > { %2769 = vmatmul.mubr.bf16.vlgmr.msra.gmra.mxu0 %v4884_v46  ;;  %v2524_v42 = vpop.f32.mrf.mxu0  ;;  %v2565_v43 = vpop.f32.mrf.mxu1  ;;  %v4363_v46 = vld [vmem:[#allocation11 + $0x28] sm:$0xff]  }
 0x241   : > { %2810 = vmatmul.mubr.bf16.vlgmr.msra.gmra.mxu1 %v4878_v38  ;;  %4078 = vmatpush3.bf16.msra.mxu0 %v4359_v35  ;;  %v4364_v38 = vld [vmem:[#allocation11 + $0x60] sm:$0xff]   ;;  %v2525_v6 = vadd.f32 %v2524_v42, %v1173_v1  ;;  %v4400_v35 = vld [vmem:[#allocation11 + $0x150] sm:$0xff]   ;;  %v4415_v1 = vld [vmem:[#allocation11 + $0x198] sm:$0xff]  }
 0x242   : > { %v2526_v48 = vpop.f32.mrf.mxu0  ;;  %v2567_v49 = vpop.f32.mrf.mxu1  ;;  %4079 = vmatprep.subr.bf16.mxu0 %v4360_v37  ;;  %4100 = vmatpush3.bf16.msra.mxu1 %v4375_v39  ;;  %v4401_v37 = vld [vmem:[#allocation11 + $0x110] sm:$0xff]   ;;  %v4402_v39 = vld [vmem:[#allocation11 + $0x148] sm:$0xff]   ;;  %v4405_v42 = vld [vmem:[#allocation11 + $0x100] sm:$0xff]  }
 0x243   : > { %v2527_v51 = vadd.f32 %v2526_v48, %v1177_v40  ;;  %4101 = vmatprep.subr.bf16.mxu1 %v4376_v41  ;;  %v2566_v11 = vadd.f32 %v2565_v43, %v2525_v6  ;;  %v4403_v40 = vld [vmem:[#allocation11 + $0x108] sm:$0xff]   ;;  %v4404_v41 = vld [vmem:[#allocation11 + $0x140] sm:$0xff]   ;;  %v1181_v43 = vrot.slane %v4903_v36, %v485_v15 }
 0x244   : > { %v2528_v17 = vpop.f32.mrf.mxu0  ;;  %v2569_v53 = vpop.f32.mrf.mxu1  ;;  %v4420_v6 = vld [vmem:[#allocation11 + $0x1c0] sm:$0xff]  }
 0x245   : > { %v2568_v45 = vadd.f32 %v2567_v49, %v2527_v51  ;;  %4080 = vmatpush3.bf16.msra.mxu0 %v4361_v47  ;;  %v2818_v21 = vmax.f32 %v2566_v11, 0.0  ;;  %v1185_v47 = vrot.slane %v4903_v36, %v489_v18  ;;  %v4409_v18 = vld [vmem:[#allocation11 + $0x1b0] sm:$0xff]  }
 0x246   : > { %v2529_v54 = vpop.f32.mrf.mxu0  ;;  %v2570_v55 = vpop.f32.mrf.mxu1  ;;  %4081 = vmatprep.subr.bf16.mxu0 %v4362_v44  ;;  %4102 = vmatpush3.bf16.msra.mxu1 %v4377_v50 }
 0x247   : > { %v2819_v57 = vmax.f32 %v2568_v45, 0.0  ;;  %4103 = vmatprep.subr.bf16.mxu1 %v4378_v52  ;;  %v2826_v26 = vpack.c.bf16 %v2818_v21, %v2818_v21 }
 0x249   : > { %v2827_v59 = vpack.c.bf16 %v2819_v57, %v2819_v57  ;;  %4082 = vmatpush3.bf16.msra.mxu0 %v4363_v46  ;;  %v4407_v57 = vld [vmem:[#allocation11 + $0x1b8] sm:$0xff]  }
 0x24a   : > { %4083 = vmatprep.subr.bf16.mxu0 %v4364_v38  ;;  %4104 = vmatpush3.bf16.msra.mxu1 %v4379_v56 }
 0x24b   : > { %3385 = vmatprep.mubr.bf16.mxu0 %v2827_v59  ;;  %4105 = vmatprep.subr.bf16.mxu1 %v4380_v58  ;;  %v4408_v59 = vld [vmem:[#allocation11 + $0x1f0] sm:$0xff]  }
 0x24d   : > { %4084 = vmatpush3.bf16.msra.mxu0 %v4365_v60  ;;  %v4410_v60 = vld [vmem:[#allocation11 + $0x1e8] sm:$0xff]  }
 0x24e   : > { %4085 = vmatprep.subr.bf16.mxu0 %v4366_v61  ;;  %4106 = vmatpush3.bf16.msra.mxu1 %v4381_v62  ;;  %v4411_v61 = vld [vmem:[#allocation11 + $0x1a8] sm:$0xff]   ;;  %v4412_v62 = vld [vmem:[#allocation11 + $0x1e0] sm:$0xff]  }
 0x24f   : > { %4107 = vmatprep.subr.bf16.mxu1 %v4382_v63  ;;  %v4413_v63 = vld [vmem:[#allocation11 + $0x1a0] sm:$0xff]  }
 0x251   : > { %4086 = vmatpush3.bf16.msra.mxu0 %v4367_v0  ;;  %v4414_v0 = vld [vmem:[#allocation11 + $0x1d8] sm:$0xff]  }
 0x252   : > { %4087 = vmatprep.subr.bf16.mxu0 %v4368_v2  ;;  %4108 = vmatpush3.bf16.msra.mxu1 %v4383_v3  ;;  %v4416_v2 = vld [vmem:[#allocation11 + $0x1d0] sm:$0xff]  }
 0x253   : > { %4109 = vmatprep.subr.bf16.mxu1 %v4384_v4  ;;  %v4417_v3 = vld [vmem:[#allocation11 + $0x190] sm:$0xff]   ;;  %v4418_v4 = vld [vmem:[#allocation11 + $0x1c8] sm:$0xff]  }
 0x255   : > { %4088 = vmatpush3.bf16.msra.mxu0 %v4369_v5  ;;  %v4419_v5 = vld [vmem:[#allocation11 + $0x188] sm:$0xff]  }
 0x256   : > { %4089 = vmatprep.subr.bf16.mxu0 %v4370_v7  ;;  %4110 = vmatpush3.bf16.msra.mxu1 %v4385_v8  ;;  %v4421_v7 = vld [vmem:[#allocation11 + $0x180] sm:$0xff]   ;;  %v1188_v8 = vsub.s32 4, %v4864_v13 }
 0x257   : > { %4111 = vmatprep.subr.bf16.mxu1 %v4386_v9  ;;  %v1192_v9 = vsub.s32 5, %v4864_v13 }
 0x259   : > { %4090 = vmatpush3.bf16.msra.mxu0 %v4371_v10  ;;  %v1189_v10 = vrot.slane %v4903_v36, %v1188_v8  ;;  %v1193_v11 = vrot.slane %v4903_v36, %v1192_v9 }
 0x25a   : > { %4091 = vmatprep.subr.bf16.mxu0 %v4372_v14  ;;  %4112 = vmatpush3.bf16.msra.mxu1 %v4387_v16 }
 0x25b   : > { %4113 = vmatprep.subr.bf16.mxu1 %v4388_v19 }
 0x25d   : > { %4092 = vmatpush3.bf16.msra.mxu0 %v4373_v20 }
 0x25e   : > { %4114 = vmatpush3.bf16.msra.mxu1 %v4389_v22  ;;  %4121 = vmatprep.subr.bf16.mxu0 %v4390_v23 }
 0x25f   : > { %4143 = vmatprep.subr.bf16.mxu1 %v4406_v24 }
 0x260   : > { %3386 = vmatmul.mubr.bf16.vlgmr.msra.gmra.mxu0 %v2826_v26 }
 0x261   : > { %4122 = vmatpush3.bf16.msra.mxu0 %v4391_v25 }
 0x262   : > { %4123 = vmatprep.subr.bf16.mxu0 %v4392_v27 }
 0x265   : > { %4124 = vmatpush3.bf16.msra.mxu0 %v4393_v28 }
 0x266   : > { %4125 = vmatprep.subr.bf16.mxu0 %v4394_v29 }
 0x269   : > { %4126 = vmatpush3.bf16.msra.mxu0 %v4395_v30 }
 0x26a   : > { %4127 = vmatprep.subr.bf16.mxu0 %v4396_v31 }
 0x26d   : > { %4128 = vmatpush3.bf16.msra.mxu0 %v4397_v32 }
 0x26e   : > { %4129 = vmatprep.subr.bf16.mxu0 %v4398_v33  ;;  %v1196_v33 = vsub.s32 6, %v4864_v13 }
 0x271   : > { %4130 = vmatpush3.bf16.msra.mxu0 %v4399_v34  ;;  %v1200_v34 = vsub.s32 7, %v4864_v13 }
 0x272   : > { %4131 = vmatprep.subr.bf16.mxu0 %v4400_v35  ;;  %v1197_v35 = vrot.slane %v4903_v36, %v1196_v33 }
 0x275   : > { %4132 = vmatpush3.bf16.msra.mxu0 %v4401_v37  ;;  %v1201_v37 = vrot.slane %v4903_v36, %v1200_v34 }
 0x276   : > { %4133 = vmatprep.subr.bf16.mxu0 %v4402_v39 }
 0x279   : > { %4134 = vmatpush3.bf16.msra.mxu0 %v4403_v40 }
 0x27a   : > { %4135 = vmatprep.subr.bf16.mxu0 %v4404_v41 }
 0x27d   : > { %4136 = vmatpush3.bf16.msra.mxu0 %v4405_v42 }
 0x280   : > { %v2606_v48 = vpop.f32.mrf.mxu0  ;;  %v2647_v49 = vpop.f32.mrf.mxu1 }
 0x281   : > { %v2607_v44 = vadd.f32 %v2606_v48, %v1181_v43 }
 0x282   : > { %v2608_v50 = vpop.f32.mrf.mxu0  ;;  %v2649_v51 = vpop.f32.mrf.mxu1 }
 0x283   : > { %v2648_v52 = vadd.f32 %v2647_v49, %v2607_v44  ;;  %v2609_v17 = vadd.f32 %v2608_v50, %v1185_v47 }
 0x284   : > { %v2610_v53 = vpop.f32.mrf.mxu0  ;;  %v2651_v45 = vpop.f32.mrf.mxu1 }
 0x285   : > { %v2650_v46 = vadd.f32 %v2649_v51, %v2609_v17  ;;  %v2820_v54 = vmax.f32 %v2648_v52, 0.0 }
 0x286   : > { %v2611_v55 = vpop.f32.mrf.mxu0  ;;  %v2652_v38 = vpop.f32.mrf.mxu1 }
 0x287   : > { %v2821_v56 = vmax.f32 %v2650_v46, 0.0  ;;  %v2828_v58 = vpack.c.bf16 %v2820_v54, %v2820_v54 }
 0x289   : > { %v2829_v15 = vpack.c.bf16 %v2821_v56, %v2821_v56  ;;  %v4005_v56 = vld [vmem:[%s4983_s6] ss:$0 sm:$0xff] }
 0x28b   : > { %3425 = vmatprep.mubr.bf16.mxu1 %v2829_v15 }
 0x28c   : > { %3426 = vmatmul.mubr.bf16.vlgmr.msra.gmra.mxu1 %v2828_v58 }
 0x28d   : > { %4144 = vmatpush3.bf16.msra.mxu1 %v4407_v57 }
 0x28e   : > { %4145 = vmatprep.subr.bf16.mxu1 %v4408_v59 }
 0x291   : > { %4146 = vmatpush3.bf16.msra.mxu1 %v4409_v18 }
 0x292   : > { %4147 = vmatprep.subr.bf16.mxu1 %v4410_v60 }
 0x295   : > { %4148 = vmatpush3.bf16.msra.mxu1 %v4411_v61 }
 0x296   : > { %4149 = vmatprep.subr.bf16.mxu1 %v4412_v62 }
 0x299   : > { %4150 = vmatpush3.bf16.msra.mxu1 %v4413_v63 }
 0x29a   : > { %4151 = vmatprep.subr.bf16.mxu1 %v4414_v0 }
 0x29d   : > { %4152 = vmatpush3.bf16.msra.mxu1 %v4415_v1 }
 0x29e   : > { %4153 = vmatprep.subr.bf16.mxu1 %v4416_v2 }
 0x2a1   : > { %4154 = vmatpush3.bf16.msra.mxu1 %v4417_v3 }
 0x2a2   : > { %4155 = vmatprep.subr.bf16.mxu1 %v4418_v4 }
 0x2a5   : > { %4156 = vmatpush3.bf16.msra.mxu1 %v4419_v5 }
 0x2a6   : > { %4157 = vmatprep.subr.bf16.mxu1 %v4420_v6 }
 0x2a9   : > { %4158 = vmatpush3.bf16.msra.mxu1 %v4421_v7 }
 0x2c0   : > { %v2688_v14 = vpop.f32.mrf.mxu0 }
 0x2c1   : > { %v2689_v16 = vadd.f32 %v2688_v14, %v1189_v10  ;;  %v2729_v19 = vpop.f32.mrf.mxu1  ;;  %v4070_v10 = vld [vmem:[%s4984_s7] ss:$0 sm:$0xff] }
 0x2c2   : > { %v2690_v20 = vpop.f32.mrf.mxu0 }
 0x2c3   : > { %v2730_v21 = vadd.f32 %v2729_v19, %v2689_v16  ;;  %v2691_v22 = vadd.f32 %v2690_v20, %v1193_v11  ;;  %v2731_v23 = vpop.f32.mrf.mxu1  ;;  %v4639_v16 = vmov 0   ;;  %v4071_v19 = vld [vmem:[#allocation2] ss:$0 sm:$0xff] }
 0x2c4   : > { %v2692_v24 = vpop.f32.mrf.mxu0  ;;  %4259 = vset.pattern.permute.xlu0 %v4639_v16 }
 0x2c5   : > { %v2732_v25 = vadd.f32 %v2731_v23, %v2691_v22  ;;  %v2733_v26 = vpop.f32.mrf.mxu1  ;;  %v2822_v27 = vmax.f32 %v2730_v21, 0.0  ;;  %v3533_v22 = vand.u32 127, %v475_v12 }
 0x2c6   : > { %v2693_v28 = vpop.f32.mrf.mxu0 }
 0x2c7   : > { %v2823_v29 = vmax.f32 %v2732_v25, 0.0  ;;  %v2734_v30 = vpop.f32.mrf.mxu1  ;;  %v2830_v32 = vpack.c.bf16 %v2822_v27, %v2822_v27  ;;  %vm3534_vm0 = vcmp.lt.s32.totalorder %v3533_v22, 4  ;;  %vm3536_vm1 = vcmp.eq.s32.totalorder %v3533_v22, 4 }
 0x2c9   : > { %v2831_v31 = vpack.c.bf16 %v2823_v29, %v2823_v29 }
 0x2cb   : > { %3465 = vmatprep.mubr.bf16.mxu0 %v2831_v31 }
 0x2cc   : > { %3466 = vmatmul.mubr.bf16.vlgmr.msra.gmra.mxu0 %v2830_v32 }
 0x300   : > { %v2770_v39 = vpop.f32.mrf.mxu0 }
 0x301   : > { %v2771_v40 = vadd.f32 %v2770_v39, %v1197_v35  ;;  %v2811_v41 = vpop.f32.mrf.mxu1 }
 0x302   : > { %v2772_v42 = vpop.f32.mrf.mxu0 }
 0x303   : > { %v2812_v43 = vadd.f32 %v2811_v41, %v2771_v40  ;;  %v2773_v47 = vadd.f32 %v2772_v42, %v1201_v37  ;;  %v2813_v48 = vpop.f32.mrf.mxu1 }
 0x304   : > { %v2774_v49 = vpop.f32.mrf.mxu0 }
 0x305   : > { %v2814_v44 = vadd.f32 %v2813_v48, %v2773_v47  ;;  %v2815_v50 = vpop.f32.mrf.mxu1  ;;  %v2824_v51 = vmax.f32 %v2812_v43, 0.0 }
 0x306   : > { %v2775_v52 = vpop.f32.mrf.mxu0 }
 0x307   : > { %v2825_v17 = vmax.f32 %v2814_v44, 0.0  ;;  %v2816_v53 = vpop.f32.mrf.mxu1  ;;  %v2832_v13 = vpack.c.bf16 %v2824_v51, %v2824_v51 }
 0x309   : > { %v2833_v45 = vpack.c.bf16 %v2825_v17, %v2825_v17 }
 0x30b   : > { %3505 = vmatprep.mubr.bf16.mxu1 %v2833_v45 }
 0x30c   : > { %3506 = vmatmul.mubr.bf16.vlgmr.msra.gmra.mxu1 %v2832_v13 }
 0x320   : > { %v4093_v46 = vpop.f32.mrf.mxu0 }
 0x322   : > { %v4094_v36 = vpop.f32.mrf.mxu0 }
 0x323   : > { %v4095_v54 = vadd.f32 %v4094_v36, %v4093_v46 }
 0x324   : > { %v4096_v55 = vpop.f32.mrf.mxu0 }
 0x325   : > { %v3388_v58 = vadd.f32 %v4095_v54, %v4005_v56 }
 0x326   : > { %v4097_v38 = vpop.f32.mrf.mxu0 }
 0x34c   : > { %v4115_v15 = vpop.f32.mrf.mxu1 }
 0x34e   : > { %v4116_v57 = vpop.f32.mrf.mxu1 }
 0x34f   : > { %v4117_v59 = vadd.f32 %v4116_v57, %v4115_v15 }
 0x350   : > { %v4118_v18 = vpop.f32.mrf.mxu1 }
 0x351   : > { %v3428_v60 = vadd.f32 %v4117_v59, %v3388_v58 }
 0x352   : > { %v4119_v61 = vpop.f32.mrf.mxu1 }
 0x38c   : > { %v4137_v62 = vpop.f32.mrf.mxu0 }
 0x38e   : > { %v4138_v63 = vpop.f32.mrf.mxu0 }
 0x38f   : > { %v4139_v0 = vadd.f32 %v4138_v63, %v4137_v62 }
 0x390   : > { %v4140_v1 = vpop.f32.mrf.mxu0 }
 0x391   : > { %v3468_v2 = vadd.f32 %v4139_v0, %v3428_v60 }
 0x392   : > { %v4141_v3 = vpop.f32.mrf.mxu0 }
 0x3cc   : > { %v4159_v4 = vpop.f32.mrf.mxu1 }
 0x3ce   : > { %v4160_v5 = vpop.f32.mrf.mxu1 }
 0x3cf   : > { %v4161_v6 = vadd.f32 %v4160_v5, %v4159_v4 }
 0x3d0   : > { %v4162_v7 = vpop.f32.mrf.mxu1 }
 0x3d1   : > { %v3508_v8 = vadd.f32 %v4161_v6, %v3468_v2 }
 0x3d2   : > { %v4163_v9 = vpop.f32.mrf.mxu1 }
 0x3d3   : > { %v3513_v11 = vmax.f32 %v3508_v8, 0.0  ;;  %v3535_v23 = vsel %vm3534_vm0, %v3508_v8, 0.0 }
 0x3d5   : > { %v3521_v14 = vmul.f32 %v4070_v10, %v3513_v11 }
 0x3d7   : > { %3522 = vadd.xlane.f32.xlu0 %v3521_v14 }
 0x460   : > { %v3523_v20 = vpop.xlane.xlu0 %3522 }
 0x461   : > { %v3531_v21 = vadd.f32 %v4071_v19, %v3523_v20 }
 0x463   : > { %3539 = vperm.xlu0 %4259, %v3531_v21  }
 0x4de   : > { %v3540_v24 = vpop.permute.xlu0 %3539 }
 0x4df   : > { %v3542_v25 = vsel %vm3536_vm1, %v3540_v24, %v3535_v23 }
 0x4e0   : > { %3543 = vst [vmem:[%s406_s22] sm:$0xff] %v3542_v25 }
 0x4e1   : > { %4567 = shalt.err (!%p4564_p11)
}
 0x4e2   : > { %s4568_s15 = scalar_lea.hbm %s4940_s18, 128  ;;  %s4572_s28 = scalar_lea.hbm %s4986_s9, 256 }
 0x4e3   : > { %p4569_p13 = scmp.ne.s32.totalorder %s4940_s18, %s4568_s15  ;;  %p4573_p4 = scmp.lt.s32.totalorder %s4940_s18, %s4986_s9 }
 0x4e4   : > { %p4574_p6 = scmp.lt.s32.totalorder %s4572_s28, %s4568_s15 }
 0x4e5   : > { %p4570_p1 = pnand %p4569_p13, %p5010_p7 }
 0x4e6   : > { %p4575_p2 = por %p4574_p6, %p4573_p4 }
 0x4e7   : > { %p4571_p3 = pneg %p4570_p1 }
 0x4e9   : > { %p4576_p8 = pnand %p4575_p2, %p4571_p3 }
 0x4eb   : > { %4579 = shalt.err (!%p4576_p8)
}
 0x4ec   : > { %4183 = dma.vmem_to_hbm [thread:$0]  (%p5010_p7), %s3559_s23, 128, %s4940_s18, %s3545_s2  }
 0x4ed PF: > { %s3570_s25 = sand.u32 1, %s4614_s11   ;;  %p5011_p10 = scmp.ne.s32.totalorder %s5002_s19, 0 }
 0x4ee   : > { %p5012_p0 = scmp.ge.s32.totalorder %s4626_s14, 2  ;;  %s3571_s22 = scalar_lea.sflag [#allocation5], %s3570_s25 }
 0x4f0   : > { %p4203_p12 = pnand %p5012_p0, %p5011_p10 }
 0x4f2   : > { %p4204_p5 = pneg %p4203_p12 }
 0x4f4   : > { %4609 = dma.done.wait (%p4204_p5), %s3571_s22, 128  }
 0x4f5   : > { %4611 = vsyncadd (%p4204_p5), %s3571_s22, 4294967168  ;;  %p26_p9 = scmp.ge.s32.totalorder %s4779_s29, 4   ;;  %s5013_s11 = smov %s4618_s12 }
 0x4f6   : > { %s5014_s12 = smov %s4622_s13  ;;  %s5015_s13 = smov %s4790_s8 }
 0x4f7   : > { %s5016_s14 = smov %s4779_s29  ;;  %28 = sbr.rel (!%p26_p9) target bundleno = 11 (0xb), region = 117 }
 0x4fc   :  { %3576 = vsyncpa [#allocation4], 1 }
 0x4fd   :  { %3578 = vsyncpa [#allocation4 + $0x1], 1 }
 0x4fe   :  { %3579 = vsyncpa [#allocation7], 1 }
 0x4ff   :  { %3580 = vsyncpa [#allocation10], 1 }
 0x500   :  { %3581 = vsyncpa [#allocation5], 1 }
 0x501   :  { %3583 = vsyncpa [#allocation5 + $0x1], 1 }

</bundles_post_ra>
